<compile_context>
chip_gen: v6e
topology: v6e:2x2x1
jax: 0.10.0
libtpu: 0.0.40
codegen_flags: <defaults>
</compile_context>

<pallas_src>
import functools

import jax
import jax.numpy as jnp
from jax import lax
from jax.experimental import pallas as pl
from jax.experimental.pallas import tpu as pltpu

EPS = 1e-5
_LANE = 128                        # channel padding granularity (lane width)
_VMEM_LIMIT = 48 * 1024 * 1024     # explicit scoped-VMEM cap (fits v7x 64 MiB)


# ---------------------------------------------------------------------------
# small helpers (plain JAX layout glue)
# ---------------------------------------------------------------------------
def _round_up(n, m):
    return ((n + m - 1) // m) * m


def _pick_tile(c, pref=256):
    # c is a multiple of 128; prefer 256-wide tiles (v6e/v7x MXU), fall back 128.
    return pref if c % pref == 0 else _LANE


def _pad_last(a, c):
    p = c - a.shape[-1]
    if p == 0:
        return a
    return jnp.pad(a, [(0, 0)] * (a.ndim - 1) + [(0, p)])


def _pad_last2(a, c_in, c_out):
    pi = c_in - a.shape[-2]
    po = c_out - a.shape[-1]
    if pi == 0 and po == 0:
        return a
    return jnp.pad(a, [(0, 0)] * (a.ndim - 2) + [(0, pi), (0, po)])


def _phase_split(xp, s):
    """(N,Hp,Wp,C) -> (N, s*s, Hp//s, Wp//s, C); out[n,p*s+q,i,j] = xp[n,i*s+p,j*s+q]."""
    if s == 1:
        return xp[:, None]
    n, hp, wp, c = xp.shape
    hr, wr = (-hp) % s, (-wp) % s
    if hr or wr:
        xp = jnp.pad(xp, ((0, 0), (0, hr), (0, wr), (0, 0)))
        n, hp, wp, c = xp.shape
    x6 = xp.reshape(n, hp // s, s, wp // s, s, c)
    x6 = jnp.transpose(x6, (0, 2, 4, 1, 3, 5))
    return x6.reshape(n, s * s, hp // s, wp // s, c)


# ---------------------------------------------------------------------------
# Pallas kernels
# ---------------------------------------------------------------------------
def _conv3x3_stats_kernel(x_ref, w_ref, o_ref, st_ref, *, kh, kw, stride, ho, wo):
    """3x3 (or general KHxKW) conv for one image / one Cout tile.

    x_ref : (1, s*s, Hp2, Wp2, Cin)   bf16  phase-split padded image
    w_ref : (kh, kw, Cin, tn)         bf16
    o_ref : (1, ho, wo, tn)           f32   conv output tile
    st_ref: (1, 2, tn)                f32   [sum, sum_sq] over this tile's rows
    """
    cin = x_ref.shape[-1]
    tn = o_ref.shape[-1]
    acc = jnp.zeros((ho * wo, tn), jnp.float32)
    for ky in range(kh):
        for kx in range(kw):
            ph = (ky % stride) * stride + (kx % stride)
            ha = ky // stride
            wa = kx // stride
            win = x_ref[0, ph, ha:ha + ho, wa:wa + wo, :]          # (ho, wo, cin)
            acc = acc + jnp.dot(win.reshape(ho * wo, cin),
                                w_ref[ky, kx, :, :],
                                preferred_element_type=jnp.float32)
    o_ref[...] = acc.reshape(1, ho, wo, tn)
    col_sum = jnp.sum(acc, axis=0, keepdims=True)
    col_sq = jnp.sum(acc * acc, axis=0, keepdims=True)
    st_ref[...] = jnp.concatenate([col_sum, col_sq], axis=0).reshape(1, 2, tn)


def _matmul_bias_kernel(a_ref, w_ref, b_ref, o_ref):
    # o = a @ w + b   (a: (tm,K) bf16, w: (K,tn) bf16, b: (1,tn) f32)
    acc = jnp.dot(a_ref[...], w_ref[...], preferred_element_type=jnp.float32)
    o_ref[...] = (acc + b_ref[...]).astype(o_ref.dtype)


def _scale_shift_relu_kernel(x_ref, sc_ref, sh_ref, o_ref):
    # y = relu(x * scale + shift)  -- BN normalize with precomputed affine
    o_ref[...] = jnp.maximum(x_ref[...] * sc_ref[...] + sh_ref[...], 0.0
                             ).astype(o_ref.dtype)


def _scale_shift_add_relu_kernel(x_ref, r_ref, sc_ref, sh_ref, o_ref):
    # y = relu(x * scale + shift + skip)
    y = x_ref[...] * sc_ref[...] + sh_ref[...] + r_ref[...]
    o_ref[...] = jnp.maximum(y, 0.0).astype(o_ref.dtype)


# ---------------------------------------------------------------------------
# Pallas wrappers
# ---------------------------------------------------------------------------
def conv3x3_stats(x, w, *, stride):
    """x: (N,H,W,Cin) f32 (Cin mult of 128), w: (KH,KW,Cin,Cout) f32 (Cout mult
    of 128). Returns (conv_out (N,Ho,Wo,Cout) f32, stats (N,2,Cout) f32)."""
    n, h, wd, cin = x.shape
    kh, kw, _, cout = w.shape
    pad = (kh - 1) // 2
    ho = (h + 2 * pad - kh) // stride + 1
    wo = (wd + 2 * pad - kw) // stride + 1

    xp = jnp.pad(x, ((0, 0), (pad, pad), (pad, pad), (0, 0))).astype(jnp.bfloat16)
    xph = _phase_split(xp, stride)             # (N, s*s, Hp2, Wp2, Cin) bf16
    _, ss, hp2, wp2, _ = xph.shape
    wb = w.astype(jnp.bfloat16)

    tn = _pick_tile(cout)
    kernel = functools.partial(_conv3x3_stats_kernel,
                               kh=kh, kw=kw, stride=stride, ho=ho, wo=wo)
    out, stats = pl.pallas_call(
        kernel,
        out_shape=(jax.ShapeDtypeStruct((n, ho, wo, cout), jnp.float32),
                   jax.ShapeDtypeStruct((n, 2, cout), jnp.float32)),
        grid=(n, cout // tn),
        in_specs=[
            pl.BlockSpec((1, ss, hp2, wp2, cin), lambda i, j: (i, 0, 0, 0, 0)),
            pl.BlockSpec((kh, kw, cin, tn), lambda i, j: (0, 0, 0, j)),
        ],
        out_specs=(
            pl.BlockSpec((1, ho, wo, tn), lambda i, j: (i, 0, 0, j)),
            pl.BlockSpec((1, 2, tn), lambda i, j: (i, 0, j)),
        ),
        compiler_params=pltpu.CompilerParams(
            dimension_semantics=("parallel", "parallel"),
            vmem_limit_bytes=_VMEM_LIMIT),
    )(xph, wb)
    return out, stats


def conv1x1_bias(x, w2d, b, *, stride, tm=256):
    """1x1 conv with stride (skip path). x: (N,H,W,Cin), w2d: (Cin,Cout), b: (Cout,)."""
    n, h, wd, cin = x.shape
    cout = w2d.shape[1]
    xd = x[:, ::stride, ::stride, :]
    _, ho, wo, _ = xd.shape
    m = n * ho * wo
    a = xd.reshape(m, cin).astype(jnp.bfloat16)
    wb = w2d.astype(jnp.bfloat16)
    tm = min(tm, m)
    tn = _pick_tile(cout)
    out = pl.pallas_call(
        _matmul_bias_kernel,
        out_shape=jax.ShapeDtypeStruct((m, cout), jnp.float32),
        grid=(pl.cdiv(m, tm), cout // tn),
        in_specs=[
            pl.BlockSpec((tm, cin), lambda i, j: (i, 0)),
            pl.BlockSpec((cin, tn), lambda i, j: (0, j)),
            pl.BlockSpec((1, tn), lambda i, j: (0, j)),
        ],
        out_specs=pl.BlockSpec((tm, tn), lambda i, j: (i, j)),
        compiler_params=pltpu.CompilerParams(
            dimension_semantics=("parallel", "parallel"),
            vmem_limit_bytes=_VMEM_LIMIT),
    )(a, wb, b.reshape(1, cout))
    return out.reshape(n, ho, wo, cout)


def scale_shift_relu(x2d, scale, shift, *, tm=512):
    m, c = x2d.shape
    tm = min(tm, m)
    return pl.pallas_call(
        _scale_shift_relu_kernel,
        out_shape=jax.ShapeDtypeStruct((m, c), jnp.float32),
        grid=(pl.cdiv(m, tm),),
        in_specs=[pl.BlockSpec((tm, c), lambda i: (i, 0)),
                  pl.BlockSpec((1, c), lambda i: (0, 0)),
                  pl.BlockSpec((1, c), lambda i: (0, 0))],
        out_specs=pl.BlockSpec((tm, c), lambda i: (i, 0)),
        compiler_params=pltpu.CompilerParams(
            dimension_semantics=("parallel",),
            vmem_limit_bytes=_VMEM_LIMIT),
    )(x2d, scale, shift)


def scale_shift_add_relu(x2d, skip2d, scale, shift, *, tm=512):
    m, c = x2d.shape
    tm = min(tm, m)
    return pl.pallas_call(
        _scale_shift_add_relu_kernel,
        out_shape=jax.ShapeDtypeStruct((m, c), jnp.float32),
        grid=(pl.cdiv(m, tm),),
        in_specs=[pl.BlockSpec((tm, c), lambda i: (i, 0)),
                  pl.BlockSpec((tm, c), lambda i: (i, 0)),
                  pl.BlockSpec((1, c), lambda i: (0, 0)),
                  pl.BlockSpec((1, c), lambda i: (0, 0))],
        out_specs=pl.BlockSpec((tm, c), lambda i: (i, 0)),
        compiler_params=pltpu.CompilerParams(
            dimension_semantics=("parallel",),
            vmem_limit_bytes=_VMEM_LIMIT),
    )(x2d, skip2d, scale, shift)


def _stats_to_scale_shift(stats, gamma, beta, count):
    """stats: (N,2,C) [sum, sum_sq] per image -> BN scale/shift, shape (1,C)."""
    s = jnp.sum(stats, axis=0)                      # (2, C)
    mean = s[0] / count
    # single-pass biased variance; clamp against tiny fp cancellation
    var = jnp.maximum(s[1] / count - mean * mean, 0.0)
    scale = gamma * lax.rsqrt(var + EPS)
    shift = beta - mean * scale
    return scale.reshape(1, -1), shift.reshape(1, -1)


# ---------------------------------------------------------------------------
# Residual module
# ---------------------------------------------------------------------------
class ResidualPallas:
    def __init__(self, in_channels, out_channels, use_1x1conv=False, stride=1,
                 key=jax.random.PRNGKey(0)):
        k1, k2, k3, k4, k5, k6 = jax.random.split(key, 6)
        s = 0.1
        self.stride = stride
        # conv weights stored HWIO (kh, kw, cin, cout)
        self.w1 = (jax.random.normal(k1, (3, 3, in_channels, out_channels)) * s
                   ).astype(jnp.float32)
        self.b1 = (jax.random.normal(k2, (out_channels,)) * s).astype(jnp.float32)
        self.w2 = (jax.random.normal(k3, (3, 3, out_channels, out_channels)) * s
                   ).astype(jnp.float32)
        self.b2 = (jax.random.normal(k4, (out_channels,)) * s).astype(jnp.float32)
        if use_1x1conv:
            self.w3 = (jax.random.normal(k5, (1, 1, in_channels, out_channels)) * s
                       ).astype(jnp.float32)
            self.b3 = (jax.random.normal(k6, (out_channels,)) * s).astype(jnp.float32)
        else:
            self.w3 = None
            self.b3 = None
        # BatchNorm affine params at PyTorch defaults (gamma=1, beta=0)
        self.gamma1 = jnp.ones((out_channels,), jnp.float32)
        self.beta1 = jnp.zeros((out_channels,), jnp.float32)
        self.gamma2 = jnp.ones((out_channels,), jnp.float32)
        self.beta2 = jnp.zeros((out_channels,), jnp.float32)

    def __call__(self, x_nchw):
        # accept NCHW (PyTorch), compute in NHWC, return NCHW.
        x = jnp.transpose(x_nchw, (0, 2, 3, 1)).astype(jnp.float32)
        n, h, wd, cin = x.shape
        cout = self.w1.shape[-1]
        cpi = _round_up(cin, _LANE)          # lane-dense channel padding
        cpo = _round_up(cout, _LANE)

        xc = _pad_last(x, cpi)
        w1p = _pad_last2(self.w1, cpi, cpo)
        w2p = _pad_last2(self.w2, cpo, cpo)
        g1 = _pad_last(self.gamma1, cpo)
        be1 = _pad_last(self.beta1, cpo)
        g2 = _pad_last(self.gamma2, cpo)
        be2 = _pad_last(self.beta2, cpo)

        # conv1 (3x3, stride s) + fused BN stats; bias b1 dropped (BN cancels it)
        y1, st1 = conv3x3_stats(xc, w1p, stride=self.stride)
        n_, ho, wo, _ = y1.shape
        cnt = n_ * ho * wo
        sc1, sh1 = _stats_to_scale_shift(st1, g1, be1, cnt)
        y1n = scale_shift_relu(y1.reshape(cnt, cpo), sc1, sh1
                               ).reshape(n_, ho, wo, cpo)

        # conv2 (3x3, stride 1) + fused BN stats; bias b2 dropped (BN cancels it)
        y2, st2 = conv3x3_stats(y1n, w2p, stride=1)
        sc2, sh2 = _stats_to_scale_shift(st2, g2, be2, cnt)

        # skip path
        if self.w3 is not None:
            w3p = _pad_last2(self.w3.reshape(self.w3.shape[2], self.w3.shape[3]),
                             cpi, cpo)
            b3p = _pad_last(self.b3, cpo)
            skip = conv1x1_bias(xc, w3p, b3p, stride=self.stride)
        else:
            skip = xc   # requires in_channels == out_channels and stride == 1

        out = scale_shift_add_relu(y2.reshape(cnt, cpo), skip.reshape(cnt, cpo),
                                   sc2, sh2).reshape(n_, ho, wo, cpo)
        out = out[..., :cout]                 # drop channel padding
        return jnp.transpose(out, (0, 3, 1, 2))


# ---------------------------------------------------------------------------
# Pure-JAX reference (emulates bf16 conv operands / f32 accumulation)
# ---------------------------------------------------------------------------
def _conv_ref(x, w, b, stride):
    pad = (w.shape[0] - 1) // 2
    xb = x.astype(jnp.bfloat16).astype(jnp.float32)
    wb = w.astype(jnp.bfloat16).astype(jnp.float32)
    out = lax.conv_general_dilated(
        xb, wb, (stride, stride), padding=[(pad, pad), (pad, pad)],
        dimension_numbers=("NHWC", "HWIO", "NHWC"))
    return out + b


def _bn_ref(x, gamma, beta):
    mean = jnp.mean(x, axis=(0, 1, 2), keepdims=True)
    var = jnp.mean((x - mean) ** 2, axis=(0, 1, 2), keepdims=True)
    return (x - mean) * lax.rsqrt(var + EPS) * gamma + beta


def residual_ref(mod, x_nchw):
    x = jnp.transpose(x_nchw, (0, 2, 3, 1)).astype(jnp.float32)
    y = jax.nn.relu(_bn_ref(_conv_ref(x, mod.w1, mod.b1, mod.stride),
                            mod.gamma1, mod.beta1))
    y = _bn_ref(_conv_ref(y, mod.w2, mod.b2, 1), mod.gamma2, mod.beta2)
    skip = _conv_ref(x, mod.w3, mod.b3, mod.stride) if mod.w3 is not None else x
    out = jax.nn.relu(y + skip)
    return jnp.transpose(out, (0, 3, 1, 2))


# ---------------------------------------------------------------------------
if __name__ == "__main__":
    key = jax.random.PRNGKey(0)
    kx1, kp1, kx2, kp2 = jax.random.split(key, 4)

    # case 1: projection skip, stride 2 — batch=2, cin=4, cout=8, spatial=16
    x1 = jax.random.normal(kx1, (2, 4, 16, 16), dtype=jnp.float32)
    block1 = ResidualPallas(in_channels=4, out_channels=8,
                            use_1x1conv=True, stride=2, key=kp1)
    out1 = jax.block_until_ready(block1(x1))
    assert out1.shape == (2, 8, 8, 8), out1.shape
    ref1 = jax.block_until_ready(residual_ref(block1, x1))
    err1 = float(jnp.max(jnp.abs(out1 - ref1)))
    assert jnp.allclose(out1, ref1, atol=1e-2, rtol=1e-2), err1

    # case 2: identity skip, stride 1 — batch=2, cin=cout=8, spatial=16
    x2 = jax.random.normal(kx2, (2, 8, 16, 16), dtype=jnp.float32)
    block2 = ResidualPallas(in_channels=8, out_channels=8,
                            use_1x1conv=False, stride=1, key=kp2)
    out2 = jax.block_until_ready(block2(x2))
    assert out2.shape == (2, 8, 16, 16), out2.shape
    ref2 = jax.block_until_ready(residual_ref(block2, x2))
    err2 = float(jnp.max(jnp.abs(out2 - ref2)))
    assert jnp.allclose(out2, ref2, atol=1e-2, rtol=1e-2), err2

    print("KERNEL_OK")
</pallas_src>

<mosaic_0001>
module attributes {stable_mosaic.version = 11 : i64} {
  func.func @_conv3x3_stats_kernel(%arg0: i32, %arg1: i32, %arg2: memref<1x4x9x9x128xbf16, #tpu.memory_space<vmem>>, %arg3: memref<3x3x128x128xbf16, #tpu.memory_space<vmem>>, %arg4: memref<1x8x8x128xf32, #tpu.memory_space<vmem>>, %arg5: memref<1x2x128xf32, #tpu.memory_space<vmem>>) attributes {dimension_semantics = [#tpu.dimension_semantics<parallel>, #tpu.dimension_semantics<parallel>], iteration_bounds = array<i64: 2, 1>, scalar_prefetch = 0 : i64, scratch_operands = 0 : i64, tpu.core_type = #tpu.core_type<tc>, window_params = [{transform_indices = @transform_0, window_bounds = array<i64: 1, 4, 9, 9, 128>}, {transform_indices = @transform_1, window_bounds = array<i64: 3, 3, 128, 128>}, {transform_indices = @transform_2, window_bounds = array<i64: 1, 8, 8, 128>}, {transform_indices = @transform_3, window_bounds = array<i64: 1, 2, 128>}]} {
    %cst = arith.constant 0.000000e+00 : f32
    %0 = vector.broadcast %cst : f32 to vector<64x128xf32>
    %c0 = arith.constant 0 : index
    %c0_0 = arith.constant 0 : index
    %c0_1 = arith.constant 0 : index
    %c0_2 = arith.constant 0 : index
    %c0_3 = arith.constant 0 : index
    %1 = vector.load %arg2[%c0, %c0_0, %c0_1, %c0_2, %c0_3] : memref<1x4x9x9x128xbf16, #tpu.memory_space<vmem>>, vector<1x1x8x8x128xbf16>
    %2 = vector.shape_cast %1 : vector<1x1x8x8x128xbf16> to vector<8x8x128xbf16>
    %3 = vector.shape_cast %2 : vector<8x8x128xbf16> to vector<64x128xbf16>
    %c0_4 = arith.constant 0 : index
    %c0_5 = arith.constant 0 : index
    %c0_6 = arith.constant 0 : index
    %c0_7 = arith.constant 0 : index
    %4 = vector.load %arg3[%c0_4, %c0_5, %c0_6, %c0_7] : memref<3x3x128x128xbf16, #tpu.memory_space<vmem>>, vector<1x1x128x128xbf16>
    %5 = vector.shape_cast %4 : vector<1x1x128x128xbf16> to vector<128x128xbf16>
    %cst_8 = arith.constant dense<0.000000e+00> : vector<64x128xf32>
    %6 = tpu.matmul %3, %5, %cst_8 {dimension_numbers = #tpu.dot_dimension_numbers<[1], [0], [0], [1], [0, 0, 1, 1], [], []>} : vector<64x128xbf16>, vector<128x128xbf16>, vector<64x128xf32> -> vector<64x128xf32>
    %7 = arith.addf %0, %6 : vector<64x128xf32>
    %c0_9 = arith.constant 0 : index
    %c1 = arith.constant 1 : index
    %c0_10 = arith.constant 0 : index
    %c0_11 = arith.constant 0 : index
    %c0_12 = arith.constant 0 : index
    %8 = vector.load %arg2[%c0_9, %c1, %c0_10, %c0_11, %c0_12] : memref<1x4x9x9x128xbf16, #tpu.memory_space<vmem>>, vector<1x1x8x8x128xbf16>
    %9 = vector.shape_cast %8 : vector<1x1x8x8x128xbf16> to vector<8x8x128xbf16>
    %10 = vector.shape_cast %9 : vector<8x8x128xbf16> to vector<64x128xbf16>
    %c0_13 = arith.constant 0 : index
    %c1_14 = arith.constant 1 : index
    %c0_15 = arith.constant 0 : index
    %c0_16 = arith.constant 0 : index
    %11 = vector.load %arg3[%c0_13, %c1_14, %c0_15, %c0_16] : memref<3x3x128x128xbf16, #tpu.memory_space<vmem>>, vector<1x1x128x128xbf16>
    %12 = vector.shape_cast %11 : vector<1x1x128x128xbf16> to vector<128x128xbf16>
    %cst_17 = arith.constant dense<0.000000e+00> : vector<64x128xf32>
    %13 = tpu.matmul %10, %12, %cst_17 {dimension_numbers = #tpu.dot_dimension_numbers<[1], [0], [0], [1], [0, 0, 1, 1], [], []>} : vector<64x128xbf16>, vector<128x128xbf16>, vector<64x128xf32> -> vector<64x128xf32>
    %14 = arith.addf %7, %13 : vector<64x128xf32>
    %c0_18 = arith.constant 0 : index
    %c0_19 = arith.constant 0 : index
    %c0_20 = arith.constant 0 : index
    %c1_21 = arith.constant 1 : index
    %c0_22 = arith.constant 0 : index
    %15 = vector.load %arg2[%c0_18, %c0_19, %c0_20, %c1_21, %c0_22] : memref<1x4x9x9x128xbf16, #tpu.memory_space<vmem>>, vector<1x1x8x8x128xbf16>
    %16 = vector.shape_cast %15 : vector<1x1x8x8x128xbf16> to vector<8x8x128xbf16>
    %17 = vector.shape_cast %16 : vector<8x8x128xbf16> to vector<64x128xbf16>
    %c0_23 = arith.constant 0 : index
    %c2 = arith.constant 2 : index
    %c0_24 = arith.constant 0 : index
    %c0_25 = arith.constant 0 : index
    %18 = vector.load %arg3[%c0_23, %c2, %c0_24, %c0_25] : memref<3x3x128x128xbf16, #tpu.memory_space<vmem>>, vector<1x1x128x128xbf16>
    %19 = vector.shape_cast %18 : vector<1x1x128x128xbf16> to vector<128x128xbf16>
    %cst_26 = arith.constant dense<0.000000e+00> : vector<64x128xf32>
    %20 = tpu.matmul %17, %19, %cst_26 {dimension_numbers = #tpu.dot_dimension_numbers<[1], [0], [0], [1], [0, 0, 1, 1], [], []>} : vector<64x128xbf16>, vector<128x128xbf16>, vector<64x128xf32> -> vector<64x128xf32>
    %21 = arith.addf %14, %20 : vector<64x128xf32>
    %c0_27 = arith.constant 0 : index
    %c2_28 = arith.constant 2 : index
    %c0_29 = arith.constant 0 : index
    %c0_30 = arith.constant 0 : index
    %c0_31 = arith.constant 0 : index
    %22 = vector.load %arg2[%c0_27, %c2_28, %c0_29, %c0_30, %c0_31] : memref<1x4x9x9x128xbf16, #tpu.memory_space<vmem>>, vector<1x1x8x8x128xbf16>
    %23 = vector.shape_cast %22 : vector<1x1x8x8x128xbf16> to vector<8x8x128xbf16>
    %24 = vector.shape_cast %23 : vector<8x8x128xbf16> to vector<64x128xbf16>
    %c1_32 = arith.constant 1 : index
    %c0_33 = arith.constant 0 : index
    %c0_34 = arith.constant 0 : index
    %c0_35 = arith.constant 0 : index
    %25 = vector.load %arg3[%c1_32, %c0_33, %c0_34, %c0_35] : memref<3x3x128x128xbf16, #tpu.memory_space<vmem>>, vector<1x1x128x128xbf16>
    %26 = vector.shape_cast %25 : vector<1x1x128x128xbf16> to vector<128x128xbf16>
    %cst_36 = arith.constant dense<0.000000e+00> : vector<64x128xf32>
    %27 = tpu.matmul %24, %26, %cst_36 {dimension_numbers = #tpu.dot_dimension_numbers<[1], [0], [0], [1], [0, 0, 1, 1], [], []>} : vector<64x128xbf16>, vector<128x128xbf16>, vector<64x128xf32> -> vector<64x128xf32>
    %28 = arith.addf %21, %27 : vector<64x128xf32>
    %c0_37 = arith.constant 0 : index
    %c3 = arith.constant 3 : index
    %c0_38 = arith.constant 0 : index
    %c0_39 = arith.constant 0 : index
    %c0_40 = arith.constant 0 : index
    %29 = vector.load %arg2[%c0_37, %c3, %c0_38, %c0_39, %c0_40] : memref<1x4x9x9x128xbf16, #tpu.memory_space<vmem>>, vector<1x1x8x8x128xbf16>
    %30 = vector.shape_cast %29 : vector<1x1x8x8x128xbf16> to vector<8x8x128xbf16>
    %31 = vector.shape_cast %30 : vector<8x8x128xbf16> to vector<64x128xbf16>
    %c1_41 = arith.constant 1 : index
    %c1_42 = arith.constant 1 : index
    %c0_43 = arith.constant 0 : index
    %c0_44 = arith.constant 0 : index
    %32 = vector.load %arg3[%c1_41, %c1_42, %c0_43, %c0_44] : memref<3x3x128x128xbf16, #tpu.memory_space<vmem>>, vector<1x1x128x128xbf16>
    %33 = vector.shape_cast %32 : vector<1x1x128x128xbf16> to vector<128x128xbf16>
    %cst_45 = arith.constant dense<0.000000e+00> : vector<64x128xf32>
    %34 = tpu.matmul %31, %33, %cst_45 {dimension_numbers = #tpu.dot_dimension_numbers<[1], [0], [0], [1], [0, 0, 1, 1], [], []>} : vector<64x128xbf16>, vector<128x128xbf16>, vector<64x128xf32> -> vector<64x128xf32>
    %35 = arith.addf %28, %34 : vector<64x128xf32>
    %c0_46 = arith.constant 0 : index
    %c2_47 = arith.constant 2 : index
    %c0_48 = arith.constant 0 : index
    %c1_49 = arith.constant 1 : index
    %c0_50 = arith.constant 0 : index
    %36 = vector.load %arg2[%c0_46, %c2_47, %c0_48, %c1_49, %c0_50] : memref<1x4x9x9x128xbf16, #tpu.memory_space<vmem>>, vector<1x1x8x8x128xbf16>
    %37 = vector.shape_cast %36 : vector<1x1x8x8x128xbf16> to vector<8x8x128xbf16>
    %38 = vector.shape_cast %37 : vector<8x8x128xbf16> to vector<64x128xbf16>
    %c1_51 = arith.constant 1 : index
    %c2_52 = arith.constant 2 : index
    %c0_53 = arith.constant 0 : index
    %c0_54 = arith.constant 0 : index
    %39 = vector.load %arg3[%c1_51, %c2_52, %c0_53, %c0_54] : memref<3x3x128x128xbf16, #tpu.memory_space<vmem>>, vector<1x1x128x128xbf16>
    %40 = vector.shape_cast %39 : vector<1x1x128x128xbf16> to vector<128x128xbf16>
    %cst_55 = arith.constant dense<0.000000e+00> : vector<64x128xf32>
    %41 = tpu.matmul %38, %40, %cst_55 {dimension_numbers = #tpu.dot_dimension_numbers<[1], [0], [0], [1], [0, 0, 1, 1], [], []>} : vector<64x128xbf16>, vector<128x128xbf16>, vector<64x128xf32> -> vector<64x128xf32>
    %42 = arith.addf %35, %41 : vector<64x128xf32>
    %c0_56 = arith.constant 0 : index
    %c0_57 = arith.constant 0 : index
    %c1_58 = arith.constant 1 : index
    %c0_59 = arith.constant 0 : index
    %c0_60 = arith.constant 0 : index
    %43 = vector.load %arg2[%c0_56, %c0_57, %c1_58, %c0_59, %c0_60] : memref<1x4x9x9x128xbf16, #tpu.memory_space<vmem>>, vector<1x1x8x8x128xbf16>
    %44 = vector.shape_cast %43 : vector<1x1x8x8x128xbf16> to vector<8x8x128xbf16>
    %45 = vector.shape_cast %44 : vector<8x8x128xbf16> to vector<64x128xbf16>
    %c2_61 = arith.constant 2 : index
    %c0_62 = arith.constant 0 : index
    %c0_63 = arith.constant 0 : index
    %c0_64 = arith.constant 0 : index
    %46 = vector.load %arg3[%c2_61, %c0_62, %c0_63, %c0_64] : memref<3x3x128x128xbf16, #tpu.memory_space<vmem>>, vector<1x1x128x128xbf16>
    %47 = vector.shape_cast %46 : vector<1x1x128x128xbf16> to vector<128x128xbf16>
    %cst_65 = arith.constant dense<0.000000e+00> : vector<64x128xf32>
    %48 = tpu.matmul %45, %47, %cst_65 {dimension_numbers = #tpu.dot_dimension_numbers<[1], [0], [0], [1], [0, 0, 1, 1], [], []>} : vector<64x128xbf16>, vector<128x128xbf16>, vector<64x128xf32> -> vector<64x128xf32>
    %49 = arith.addf %42, %48 : vector<64x128xf32>
    %c0_66 = arith.constant 0 : index
    %c1_67 = arith.constant 1 : index
    %c1_68 = arith.constant 1 : index
    %c0_69 = arith.constant 0 : index
    %c0_70 = arith.constant 0 : index
    %50 = vector.load %arg2[%c0_66, %c1_67, %c1_68, %c0_69, %c0_70] : memref<1x4x9x9x128xbf16, #tpu.memory_space<vmem>>, vector<1x1x8x8x128xbf16>
    %51 = vector.shape_cast %50 : vector<1x1x8x8x128xbf16> to vector<8x8x128xbf16>
    %52 = vector.shape_cast %51 : vector<8x8x128xbf16> to vector<64x128xbf16>
    %c2_71 = arith.constant 2 : index
    %c1_72 = arith.constant 1 : index
    %c0_73 = arith.constant 0 : index
    %c0_74 = arith.constant 0 : index
    %53 = vector.load %arg3[%c2_71, %c1_72, %c0_73, %c0_74] : memref<3x3x128x128xbf16, #tpu.memory_space<vmem>>, vector<1x1x128x128xbf16>
    %54 = vector.shape_cast %53 : vector<1x1x128x128xbf16> to vector<128x128xbf16>
    %cst_75 = arith.constant dense<0.000000e+00> : vector<64x128xf32>
    %55 = tpu.matmul %52, %54, %cst_75 {dimension_numbers = #tpu.dot_dimension_numbers<[1], [0], [0], [1], [0, 0, 1, 1], [], []>} : vector<64x128xbf16>, vector<128x128xbf16>, vector<64x128xf32> -> vector<64x128xf32>
    %56 = arith.addf %49, %55 : vector<64x128xf32>
    %c0_76 = arith.constant 0 : index
    %c0_77 = arith.constant 0 : index
    %c1_78 = arith.constant 1 : index
    %c1_79 = arith.constant 1 : index
    %c0_80 = arith.constant 0 : index
    %57 = vector.load %arg2[%c0_76, %c0_77, %c1_78, %c1_79, %c0_80] : memref<1x4x9x9x128xbf16, #tpu.memory_space<vmem>>, vector<1x1x8x8x128xbf16>
    %58 = vector.shape_cast %57 : vector<1x1x8x8x128xbf16> to vector<8x8x128xbf16>
    %59 = vector.shape_cast %58 : vector<8x8x128xbf16> to vector<64x128xbf16>
    %c2_81 = arith.constant 2 : index
    %c2_82 = arith.constant 2 : index
    %c0_83 = arith.constant 0 : index
    %c0_84 = arith.constant 0 : index
    %60 = vector.load %arg3[%c2_81, %c2_82, %c0_83, %c0_84] : memref<3x3x128x128xbf16, #tpu.memory_space<vmem>>, vector<1x1x128x128xbf16>
    %61 = vector.shape_cast %60 : vector<1x1x128x128xbf16> to vector<128x128xbf16>
    %cst_85 = arith.constant dense<0.000000e+00> : vector<64x128xf32>
    %62 = tpu.matmul %59, %61, %cst_85 {dimension_numbers = #tpu.dot_dimension_numbers<[1], [0], [0], [1], [0, 0, 1, 1], [], []>} : vector<64x128xbf16>, vector<128x128xbf16>, vector<64x128xf32> -> vector<64x128xf32>
    %63 = arith.addf %56, %62 : vector<64x128xf32>
    %64 = vector.shape_cast %63 : vector<64x128xf32> to vector<1x8x8x128xf32>
    %c0_86 = arith.constant 0 : index
    %c0_87 = arith.constant 0 : index
    %c0_88 = arith.constant 0 : index
    %c0_89 = arith.constant 0 : index
    %65 = vector.load %arg4[%c0_86, %c0_87, %c0_88, %c0_89] : memref<1x8x8x128xf32, #tpu.memory_space<vmem>>, vector<1x8x8x128xf32>
    tpu.vector_store %arg4[%c0_86, %c0_87, %c0_88, %c0_89], %64 {strides = array<i32>} : memref<1x8x8x128xf32, #tpu.memory_space<vmem>>, vector<1x8x8x128xf32>,
    %cst_90 = arith.constant dense<0.000000e+00> : vector<128xf32>
    %66 = vector.multi_reduction <add>, %63, %cst_90 [0] : vector<64x128xf32> to vector<128xf32>
    %67 = vector.shape_cast %66 : vector<128xf32> to vector<1x128xf32>
    %68 = arith.mulf %63, %63 : vector<64x128xf32>
    %cst_91 = arith.constant dense<0.000000e+00> : vector<128xf32>
    %69 = vector.multi_reduction <add>, %68, %cst_91 [0] : vector<64x128xf32> to vector<128xf32>
    %70 = vector.shape_cast %69 : vector<128xf32> to vector<1x128xf32>
    %71 = tpu.concatenate %67, %70 in 0 : vector<1x128xf32>, vector<1x128xf32> -> vector<2x128xf32>
    %72 = vector.shape_cast %71 : vector<2x128xf32> to vector<1x2x128xf32>
    %c0_92 = arith.constant 0 : index
    %c0_93 = arith.constant 0 : index
    %c0_94 = arith.constant 0 : index
    %73 = vector.load %arg5[%c0_92, %c0_93, %c0_94] : memref<1x2x128xf32, #tpu.memory_space<vmem>>, vector<1x2x128xf32>
    tpu.vector_store %arg5[%c0_92, %c0_93, %c0_94], %72 {strides = array<i32>} : memref<1x2x128xf32, #tpu.memory_space<vmem>>, vector<1x2x128xf32>,
    return
  }
  func.func @transform_0(%arg0: i32, %arg1: i32) -> (i32, i32, i32, i32, i32) {
    %c0_i32 = arith.constant 0 : i32
    %c0_i32_0 = arith.constant 0 : i32
    %c0_i32_1 = arith.constant 0 : i32
    %c0_i32_2 = arith.constant 0 : i32
    %c0_i32_3 = arith.constant 0 : i32
    return %arg0, %c0_i32, %c0_i32_0, %c0_i32_1, %c0_i32_2 : i32, i32, i32, i32, i32
  }
  func.func @transform_1(%arg0: i32, %arg1: i32) -> (i32, i32, i32, i32) {
    %c0_i32 = arith.constant 0 : i32
    %c0_i32_0 = arith.constant 0 : i32
    %c0_i32_1 = arith.constant 0 : i32
    %c0_i32_2 = arith.constant 0 : i32
    return %c0_i32, %c0_i32_0, %c0_i32_1, %arg1 : i32, i32, i32, i32
  }
  func.func @transform_2(%arg0: i32, %arg1: i32) -> (i32, i32, i32, i32) {
    %c0_i32 = arith.constant 0 : i32
    %c0_i32_0 = arith.constant 0 : i32
    %c0_i32_1 = arith.constant 0 : i32
    return %arg0, %c0_i32, %c0_i32_0, %arg1 : i32, i32, i32, i32
  }
  func.func @transform_3(%arg0: i32, %arg1: i32) -> (i32, i32, i32) {
    %c0_i32 = arith.constant 0 : i32
    %c0_i32_0 = arith.constant 0 : i32
    return %arg0, %c0_i32, %arg1 : i32, i32, i32
  }
}

</mosaic_0001>

<bundles_post_ra>
// kernel: tpu_custom_call.1
= control target key start
LH: loop header
LB: loop body
LE: loop exit
PB: predicated region body
PF: predicated region fallthrough
CT: control target
= control target key end

     0   :  { %9 = vsyncpa [#allocation3], 0  ;;  %s3741_s0 = inlined_call_operand.vmem [shape: bf16[2,4,9,9,128], index: 0, kind: input, shape index: {}]   ;;  %s3742_s1 = inlined_call_operand.vmem [shape: bf16[3,3,128,128], index: 1, kind: input, shape index: {}]   ;;  %s3743_s2 = inlined_call_operand.hbm [shape: f32[2,8,8,128], index: 2, kind: output, shape index: {0}]   ;;  %s3744_s3 = inlined_call_operand.hbm [shape: f32[2,2,128], index: 3, kind: output, shape index: {1}]  }
   0x1   :  { %11 = vsyncpa [#allocation3 + $0x1], 0 }
   0x2   :  { %12 = vsyncpa [#allocation5], 0 }
   0x3   :  { %14 = vsyncpa [#allocation5 + $0x1], 0  ;;  %s3226_s12 = smov 0   ;;  %s3228_s13 = smov 0  }
   0x4   :  { %s3230_s14 = smov 0   ;;  %s3232_s15 = smov 0  }
   0x5   :  { %s3234_s16 = smov 0   ;;  %s3236_s17 = smov 0  }
   0x6 LB: > { %s2270_s18 = sadd.s32 4294967295, %s3200_s17   ;;  %s2271_s19 = sadd.s32 4294967294, %s3200_s17   ;;  %s3200_s17 = sphi %s3236_s17, %s20_s17   ;;  %s3196_s16 = sphi %s3234_s16, %s3767_s16   ;;  %s3192_s15 = sphi %s3232_s15, %s3766_s15   ;;  %s3188_s14 = sphi %s3230_s14, %s3765_s14   ;;  %s3184_s13 = sphi %s3228_s13, %s3764_s13   ;;  %s3180_s12 = sphi %s3226_s12, %s3763_s12  }
   0x7   : > { %s32_s20 = sadd.s32 1, %s3196_s16  ;;  %s93_s21 = sadd.s32 1, %s3188_s14 }
   0x8   : > { %p34_p0 = scmp.ge.s32.totalorder %s32_s20, 2  ;;  %p103_p1 = scmp.ne.s32.totalorder %s3188_s14, %s3184_s13 }
   0x9   : > { %p104_p2 = scmp.eq.s32.totalorder %s2270_s18, 1  ;;  %p109_p3 = scmp.ne.s32.totalorder %s3184_s13, %s3180_s12 }
   0xa   : > { %s3769_s20 = smov (%p34_p0, %s32_s20), 0  ;;  %p110_p5 = scmp.eq.s32.totalorder %s2271_s19, 1 }
   0xb   : > { %p3266_p4 = por %p104_p2, %p103_p1  ;;  %s88_s23 = ssub.s32 %s3196_s16, %s3769_s20 }
   0xc   : > { %p2275_p6 = scmp.ge.s32.totalorder %s3200_s17, 1  ;;  %p91_p7 = scmp.eq.s32.totalorder %s88_s23, 0 }
   0xd   : > { %p3273_p8 = por %p110_p5, %p109_p3  ;;  %p171_p9 = scmp.lt.s32.totalorder %s3200_s17, 3 }
   0xe   : > { %s3279_s25 = scalar_select %p91_p7, %s3188_s14, %s93_s21  }
   0xf   : > { %p172_p10 = pnand %p2275_p6, %p171_p9 }
  0x11   : > { %175 = sbr.rel (%p172_p10) target bundleno = 436 (0x1b4), region = 28 }
  0x16   : > { %v2998_v0 = vld [vmem:[%s3742_s1 + $0x78] sm:$0xff]   ;;  %p204_p11 = scmp.lt.s32.totalorder %s3192_s15, 1  ;;  %v3000_v2 = vld [vmem:[%s3742_s1 + $0x70] sm:$0xff]   ;;  %v3002_v4 = vld [vmem:[%s3742_s1 + $0x68] sm:$0xff]   ;;  %vm554_vm0 = vsmask.f32 3328 }
  0x17   : > { %v2999_v1 = vld [vmem:[%s3742_s1 + $0x38] sm:$0xff]   ;;  %2703 = vmatprep.subr.bf16.mxu0 %v2998_v0  ;;  %v3001_v3 = vld [vmem:[%s3742_s1 + $0x30] sm:$0xff]   ;;  %v3003_v5 = vld [vmem:[%s3742_s1 + $0x28] sm:$0xff]   ;;  %vm555_vm1 = vsmask.f32 7440  ;;  %s3649_s28 = sand.u32 1, %s3184_s13  }
  0x18   : > { %2727 = vmatprep.subr.bf16.mxu1 %v2999_v1  ;;  %2704 = vmatpush3.bf16.msra.mxu0 %v2998_v0  ;;  %s205_s11 = scalar_select %p204_p11, %s3192_s15, 1  ;;  %v3004_v6 = vld [vmem:[%s3742_s1 + $0x60] sm:$0xff]   ;;  %v3006_v8 = vld [vmem:[%s3742_s1 + $0x58] sm:$0xff]   ;;  %v3008_v10 = vld [vmem:[%s3742_s1 + $0x50] sm:$0xff]  }
  0x19   : > { %2728 = vmatpush3.bf16.msra.mxu1 %v2999_v1  ;;  %2705 = vmatprep.subr.bf16.mxu0 %v3000_v2  ;;  %v3005_v7 = vld [vmem:[%s3742_s1 + $0x20] sm:$0xff]   ;;  %v3007_v9 = vld [vmem:[%s3742_s1 + $0x18] sm:$0xff]   ;;  %v3009_v11 = vld [vmem:[%s3742_s1 + $0x10] sm:$0xff]   ;;  %s2276_s29 = sshll.u32 %s3649_s28, 6  ;;  %s2594_s4 = sshll.u32 %s3192_s15, 10 }
  0x1a   : > { %2729 = vmatprep.subr.bf16.mxu1 %v3001_v3  ;;  %s2935_s26 = smul.u32 288, %s205_s11  ;;  %v3010_v14 = vld [vmem:[%s3742_s1 + $0x48] sm:$0xff]   ;;  %v3012_v16 = vld [vmem:[%s3742_s1 + $0x40] sm:$0xff]   ;;  %v3018_v19 = vld [vmem:[%s3742_s1 + $0xb8] sm:$0xff]   ;;  %s196_s30 = scalar_lea.vmem [#allocation2], %s2276_s29 }
  0x1b   : > { %v3011_v15 = vld [vmem:[%s3742_s1 + $0x8] sm:$0xff]   ;;  %v3013_v17 = vld [vmem:[%s3742_s1] sm:$0xff]   ;;  %v3019_v20 = vld [vmem:[%s3742_s1 + $0xf8] sm:$0xff]   ;;  %s2136_s5 = sshll.u32 %s196_s30, 4  ;;  %s3665_s9 = scalar_lea.hbm %s3743_s2, %s2594_s4  ;;  %s3667_s5 = int_to_ptr.vmem [resolvable:$true] %s2136_s5 }
  0x1c   : > { %2706 = vmatpush3.bf16.msra.mxu0 %v3000_v2  ;;  %s3316_s6 = scalar_lea.vmem %s3741_s0, %s2935_s26  ;;  %v3020_v22 = vld [vmem:[%s3742_s1 + $0xb0] sm:$0xff]   ;;  %v3022_v26 = vld [vmem:[%s3742_s1 + $0xa8] sm:$0xff]   ;;  %v3024_v28 = vld [vmem:[%s3742_s1 + $0xa0] sm:$0xff]   ;;  %s2117_s10 = scalar_lea.sflag [#allocation3], %s3649_s28 }
  0x1d   : > { %2730 = vmatpush3.bf16.msra.mxu1 %v3001_v3  ;;  %2707 = vmatprep.subr.bf16.mxu0 %v3002_v4  ;;  %v3014_v12 = vld [vmem:[%s3316_s6 + $0x48] ss:$8 sps:$4 sm:$0xff]   ;;  %v3016_v18 = vld [vmem:[%s3316_s6 + $0x58] ss:$8 sps:$4 sm:$0xff]   ;;  %v539_v33 = vld [vmem:[%s3316_s6 + $0x4] sm:$0x1] }
  0x1e   : > { %2731 = vmatprep.subr.bf16.mxu1 %v3003_v5  ;;  %v3015_v13 = vld [vmem:[%s3316_s6] ss:$8 sps:$4 sm:$0xff]   ;;  %2719 = vmatprep.mubr.bf16.mxu0 %v3014_v12  ;;  %v3017_v21 = vld [vmem:[%s3316_s6 + $0x10] ss:$8 sps:$4 sm:$0xff]   ;;  %v541_v35 = vld [vmem:[%s3316_s6 + $0xc] sm:$0x1] }
  0x1f   : > { %2743 = vmatprep.mubr.bf16.mxu1 %v3015_v13  ;;  %v3021_v23 = vld [vmem:[%s3742_s1 + $0xf0] sm:$0xff]   ;;  %v3029_v25 = vld [vmem:[%s3316_s6 + $0x20] ss:$8 sps:$4 sm:$0xff]   ;;  %v3026_v36 = vld [vmem:[%s3742_s1 + $0x98] sm:$0xff]   ;;  %v567_v39 = vshll.u32 %v539_v33, 16  ;;  %v581_v44 = vshll.u32 %v541_v35, 16 }
  0x20   : > { %2708 = vmatpush3.bf16.msra.mxu0 %v3002_v4  ;;  %v3028_v24 = vld [vmem:[%s3316_s6 + $0x68] ss:$8 sps:$4 sm:$0xff]   ;;  %v3030_v29 = vld [vmem:[%s3316_s6 + $0x78] ss:$8 sps:$4 sm:$0xff]   ;;  %v543_v45 = vld [vmem:[%s3316_s6 + $0x14] sm:$0x1] }
  0x21   : > { %2732 = vmatpush3.bf16.msra.mxu1 %v3003_v5  ;;  %2709 = vmatprep.subr.bf16.mxu0 %v3004_v6  ;;  %v3023_v27 = vld [vmem:[%s3742_s1 + $0xe8] sm:$0xff]   ;;  %v3025_v30 = vld [vmem:[%s3742_s1 + $0xe0] sm:$0xff]   ;;  %v3031_v31 = vld [vmem:[%s3316_s6 + $0x30] ss:$8 sps:$4 sm:$0xff]   ;;  %v569_v49 = vrot.slane %v567_v39, 5  ;;  %v583_v53 = vrot.slane %v581_v44, 5 }
  0x22   : > { %2733 = vmatprep.subr.bf16.mxu1 %v3005_v7  ;;  %v538_v32 = vld [vmem:[%s3316_s6] sm:$0xf]  ;;  %v540_v34 = vld [vmem:[%s3316_s6 + $0x8] sm:$0xf]  ;;  %v542_v41 = vld [vmem:[%s3316_s6 + $0x10] sm:$0xf] }
  0x23   : > { %v558_v37 = vshrl.u32 %v538_v32, 16  ;;  %v561_v38 = vshll.u32 %v538_v32, 16  ;;  %v572_v40 = vshrl.u32 %v540_v34, 16  ;;  %v3027_v42 = vld [vmem:[%s3742_s1 + $0xd8] sm:$0xff]   ;;  %v575_v43 = vshll.u32 %v540_v34, 16  ;;  %v3032_v60 = vld [vmem:[%s3742_s1 + $0x90] sm:$0xff]   ;;  %vm3387_vm2 = vmor %vm554_vm0, %vm555_vm1 }
  0x24   : > { %2710 = vmatpush3.bf16.msra.mxu0 %v3004_v6  ;;  %v544_v46 = vld [vmem:[%s3316_s6 + $0x18] sm:$0xf]  ;;  %v545_v51 = vld [vmem:[%s3316_s6 + $0x1c] sm:$0x1]  ;;  %v586_v54 = vshrl.u32 %v542_v41, 16  ;;  %v589_v55 = vshll.u32 %v542_v41, 16 }
  0x25   : > { %2734 = vmatpush3.bf16.msra.mxu1 %v3005_v7  ;;  %2711 = vmatprep.subr.bf16.mxu0 %v3006_v8  ;;  %v560_v47 = vrot.slane %v558_v37, 4  ;;  %v563_v48 = vrot.slane %v561_v38, 5  ;;  %v574_v50 = vrot.slane %v572_v40, 4  ;;  %v577_v52 = vrot.slane %v575_v43, 5  ;;  %v3038_v2 = vld [vmem:[%s3316_s6 + $0x90] ss:$8 sps:$4 sm:$0xff]  }
  0x26   : > { %2735 = vmatprep.subr.bf16.mxu1 %v3007_v9  ;;  %v595_v57 = vshll.u32 %v543_v45, 16  ;;  %v600_v58 = vshrl.u32 %v544_v46, 16  ;;  %v603_v59 = vshll.u32 %v544_v46, 16  ;;  %v588_v63 = vrot.slane %v586_v54, 4  ;;  %v3033_v3 = vld [vmem:[%s3742_s1 + $0xd0] sm:$0xff]   ;;  %v3034_v12 = vld [vmem:[%s3742_s1 + $0x88] sm:$0xff]  }
  0x27   : > { %v564_v56 = vor.u32 %v563_v48, %v560_v47  ;;  %v578_v62 = vor.u32 %v577_v52, %v574_v50  ;;  %v591_v0 = vrot.slane %v589_v55, 5  ;;  %v609_v1 = vshll.u32 %v545_v51, 16  ;;  %v550_v32 = vld [vmem:[%s3316_s6 + $0x30] sm:$0xf]  ;;  %v552_v41 = vld [vmem:[%s3316_s6 + $0x38] sm:$0xf] }
  0x28   : > { %2712 = vmatpush3.bf16.msra.mxu0 %v3006_v8  ;;  %v602_v5 = vrot.slane %v600_v58, 4  ;;  %v605_v6 = vrot.slane %v603_v59, 5  ;;  %v642_v37 = vshrl.u32 %v550_v32, 16  ;;  %v553_v45 = vld [vmem:[%s3316_s6 + $0x3c] sm:$0x1]  ;;  %v656_v50 = vshrl.u32 %v552_v41, 16 }
  0x29   : > { %2736 = vmatpush3.bf16.msra.mxu1 %v3007_v9  ;;  %2713 = vmatprep.subr.bf16.mxu0 %v3008_v10  ;;  %v565_v4 = vrot.slane %v564_v56, 4  ;;  %v579_v7 = vrot.slane %v578_v62, 4  ;;  %v592_v8 = vor.u32 %v591_v0, %v588_v63  ;;  %v3395_v9 = vrot.slane %v595_v57, 5  ;;  %v3039_v52 = vld [vmem:[%s3742_s1 + $0x138] sm:$0xff]   ;;  %v3041_v56 = vld [vmem:[%s3316_s6 + $0xa0] ss:$8 sps:$4 sm:$0xff]  }
  0x2a   : > { %2737 = vmatprep.subr.bf16.mxu1 %v3009_v11  ;;  %v644_v46 = vrot.slane %v642_v37, 4  ;;  %v659_v51 = vshll.u32 %v552_v41, 16  ;;  %v665_v54 = vshll.u32 %v553_v45, 16  ;;  %v3040_v55 = vld [vmem:[%s3742_s1 + $0x178] sm:$0xff]   ;;  %v658_v59 = vrot.slane %v656_v50, 4  ;;  %s3094_s11 = scalar_lea.vmem %s3667_s5, 1024 }
  0x2b   : > { %v584_v13 = vsel %vm3387_vm2, %v579_v7, %v583_v53  ;;  %v3043_v7 = vld [vmem:[%s3742_s1 + $0x170] sm:$0xff]   ;;  %v2432_v41 = vld [vmem:[%s3316_s6 + $0xa4] sm:$0x1]  ;;  %p3095_p12 = scmp.ne.s32.totalorder %s3667_s5, %s3094_s11  ;;  %s3202_s18 = smov [#allocation2]  }
  0x2c   : > { %2714 = vmatpush3.bf16.msra.mxu0 %v3008_v10  ;;  %v570_v10 = vsel %vm3387_vm2, %v565_v4, %v569_v49  ;;  %s3098_s19 = sshll.u32 %s3202_s18, 4  ;;  %s3099_s19 = int_to_ptr.vmem [resolvable:$false] %s3098_s19 }
  0x2d   : > { %2738 = vmatpush3.bf16.msra.mxu1 %v3009_v11  ;;  %2715 = vmatprep.subr.bf16.mxu0 %v3010_v14  ;;  %v606_v11 = vor.u32 %v605_v6, %v602_v5  ;;  %v667_v5 = vrot.slane %v665_v54, 5  ;;  %v3046_v6 = vld [vmem:[%s3316_s6 + $0xb0] ss:$8 sps:$4 sm:$0xff]   ;;  %p3096_p13 = pnand %p3095_p12, %p3266_p4  ;;  %s3100_s21 = scalar_lea.vmem %s3099_s19, 2048 }
  0x2e   : > { %2739 = vmatprep.subr.bf16.mxu1 %v3011_v15  ;;  %p3101_p1 = scmp.lt.s32.totalorder %s3667_s5, %s3099_s19  ;;  %p3102_p2 = scmp.lt.s32.totalorder %s3100_s21, %s3094_s11 }
  0x2f   : > { %p3097_p0 = pneg %p3096_p13 }
  0x30   : > { %2716 = vmatpush3.bf16.msra.mxu0 %v3010_v14  ;;  %v593_v14 = vrot.slane %v592_v8, 4  ;;  %p3103_p3 = por %p3102_p2, %p3101_p1 }
  0x31   : > { %2740 = vmatpush3.bf16.msra.mxu1 %v3011_v15  ;;  %2717 = vmatprep.subr.bf16.mxu0 %v3012_v16  ;;  %v611_v15 = vrot.slane %v609_v1, 5  ;;  %v3042_v1 = vld [vmem:[%s3742_s1 + $0x130] sm:$0xff]  }
  0x32   : > { %2741 = vmatprep.subr.bf16.mxu1 %v3013_v17  ;;  %p3104_p5 = pnand %p3103_p3, %p3097_p0 }
  0x34   : > { %2718 = vmatpush3.bf16.msra.mxu0 %v3012_v16  ;;  %v3035_v16 = vld [vmem:[%s3742_s1 + $0xc8] sm:$0xff]  }
  0x35   : > { %2742 = vmatpush3.bf16.msra.mxu1 %v3013_v17  ;;  %2751 = vmatprep.subr.bf16.mxu0 %v3018_v19  ;;  %v2343_v17 = vcombine.low %v570_v10, %v584_v13  ;;  %v3044_v10 = vld [vmem:[%s3742_s1 + $0x128] sm:$0xff]  }
  0x36   : > { %2775 = vmatprep.subr.bf16.mxu1 %v3019_v20  ;;  %v3045_v13 = vld [vmem:[%s3742_s1 + $0x168] sm:$0xff]  }
  0x37   : > { %2720 = vmatmul.mubr.bf16.vlgmr.msra.gmra.mxu0 %v3016_v18  ;;  %v607_v18 = vrot.slane %v606_v11, 4 }
  0x38   : > { %2744 = vmatmul.mubr.bf16.vlgmr.msra.gmra.mxu1 %v3017_v21  ;;  %2752 = vmatpush3.bf16.msra.mxu0 %v3018_v19  ;;  %v546_v19 = vld [vmem:[%s3316_s6 + $0x20] sm:$0xf] }
  0x39   : > { %2776 = vmatpush3.bf16.msra.mxu1 %v3019_v20  ;;  %2753 = vmatprep.subr.bf16.mxu0 %v3020_v22  ;;  %v547_v20 = vld [vmem:[%s3316_s6 + $0x24] sm:$0x1] }
  0x3a   : > { %2777 = vmatprep.subr.bf16.mxu1 %v3021_v23  ;;  %2723 = vmatprep.mubr.bf16.mxu0 %v3028_v24  ;;  %v3036_v21 = vld [vmem:[%s3742_s1 + $0x80] sm:$0xff]   ;;  %v549_v24 = vld [vmem:[%s3316_s6 + $0x2c] sm:$0x1] }
  0x3b   : > { %2747 = vmatprep.mubr.bf16.mxu1 %v3029_v25  ;;  %v614_v25 = vshrl.u32 %v546_v19, 16  ;;  %v637_v35 = vshll.u32 %v549_v24, 16  ;;  %v2430_v24 = vld [vmem:[%s3316_s6 + $0x9c] sm:$0x1] }
  0x3c   : > { %2754 = vmatpush3.bf16.msra.mxu0 %v3020_v22  ;;  %v598_v22 = vsel %vm3387_vm2, %v593_v14, %v3395_v9 }
  0x3d   : > { %2778 = vmatpush3.bf16.msra.mxu1 %v3021_v23  ;;  %2755 = vmatprep.subr.bf16.mxu0 %v3022_v26  ;;  %v548_v23 = vld [vmem:[%s3316_s6 + $0x28] sm:$0xf]  ;;  %v616_v33 = vrot.slane %v614_v25, 4  ;;  %v639_v44 = vrot.slane %v637_v35, 5 }
  0x3e   : > { %2779 = vmatprep.subr.bf16.mxu1 %v3023_v27 }
  0x3f   : > { %2724 = vmatmul.mubr.bf16.gmra.mxu0 %v3030_v29  ;;  %v623_v29 = vshll.u32 %v547_v20, 16  ;;  %v3051_v20 = vld [vmem:[%s3742_s1 + $0x158] sm:$0xff]  }
  0x40   : > { %2756 = vmatpush3.bf16.msra.mxu0 %v3022_v26  ;;  %2748 = vmatmul.mubr.bf16.gmra.mxu1 %v3031_v31  ;;  %v617_v26 = vshll.u32 %v546_v19, 16  ;;  %v631_v31 = vshll.u32 %v548_v23, 16  ;;  %v3058_v19 = vld [vmem:[%s3316_s6 + $0xd8] ss:$8 sps:$4 sm:$0xff]  }
  0x41   : > { %2780 = vmatpush3.bf16.msra.mxu1 %v3023_v27  ;;  %2757 = vmatprep.subr.bf16.mxu0 %v3024_v28  ;;  %v3037_v27 = vld [vmem:[%s3742_s1 + $0xc0] sm:$0xff]   ;;  %v625_v38 = vrot.slane %v623_v29, 5 }
  0x42   : > { %2781 = vmatprep.subr.bf16.mxu1 %v3025_v30  ;;  %2791 = vmatprep.mubr.bf16.mxu1 %v3038_v2  ;;  %v619_v34 = vrot.slane %v617_v26, 5  ;;  %v633_v40 = vrot.slane %v631_v31, 5  ;;  %v3052_v31 = vld [vmem:[%s3742_s1 + $0x110] sm:$0xff]  }
  0x43   : > { %2767 = vmatprep.mubr.bf16.mxu0 %v2343_v17  ;;  %v3049_v17 = vld [vmem:[%s3742_s1 + $0x160] sm:$0xff]  }
  0x44   : > { %2758 = vmatpush3.bf16.msra.mxu0 %v3024_v28  ;;  %v612_v28 = vsel %vm3387_vm2, %v607_v18, %v611_v15  ;;  %v620_v43 = vor.u32 %v619_v34, %v616_v33  ;;  %v3047_v15 = vld [vmem:[%s3316_s6 + $0xc0] ss:$8 sps:$4 sm:$0xff]   ;;  %v3050_v18 = vld [vmem:[%s3742_s1 + $0x118] sm:$0xff]   ;;  %v3053_v34 = vld [vmem:[%s3742_s1 + $0x150] sm:$0xff]  }
  0x45   : > { %2782 = vmatpush3.bf16.msra.mxu1 %v3025_v30  ;;  %2759 = vmatprep.subr.bf16.mxu0 %v3026_v36  ;;  %v628_v30 = vshrl.u32 %v548_v23, 16  ;;  %v2344_v62 = vcombine.low %v598_v22, %v612_v28  ;;  %v2428_v22 = vld [vmem:[%s3316_s6 + $0x94] sm:$0x1]  ;;  %v2429_v23 = vld [vmem:[%s3316_s6 + $0x98] sm:$0xf] }
  0x46   : > { %2783 = vmatprep.subr.bf16.mxu1 %v3027_v42  ;;  %v621_v53 = vrot.slane %v620_v43, 4  ;;  %v1196_v28 = vshrl.u32 %v2429_v23, 16  ;;  %v1199_v29 = vshll.u32 %v2429_v23, 16  ;;  %v2433_v43 = vld [vmem:[%s3316_s6 + $0xa8] sm:$0xf] }
  0x47   : > { %v630_v39 = vrot.slane %v628_v30, 4  ;;  %v1205_v30 = vshll.u32 %v2430_v24, 16  ;;  %v1227_v50 = vshll.u32 %v2433_v43, 16  ;;  %v2440_v24 = vld [vmem:[%s3316_s6 + $0xc4] sm:$0x1] }
  0x48   : > { %2760 = vmatpush3.bf16.msra.mxu0 %v3026_v36  ;;  %v551_v36 = vld [vmem:[%s3316_s6 + $0x34] sm:$0x1]  ;;  %v626_v63 = vsel %vm3387_vm2, %v621_v53, %v625_v38  ;;  %v1201_v37 = vrot.slane %v1199_v29, 5  ;;  %v2441_v29 = vld [vmem:[%s3316_s6 + $0xc8] sm:$0xf] }
  0x49   : > { %2784 = vmatpush3.bf16.msra.mxu1 %v3027_v42  ;;  %2761 = vmatprep.subr.bf16.mxu0 %v3032_v60  ;;  %v645_v42 = vshll.u32 %v550_v32, 16  ;;  %v651_v47 = vshll.u32 %v551_v36, 16  ;;  %v634_v48 = vor.u32 %v633_v40, %v630_v39  ;;  %v1198_v36 = vrot.slane %v1196_v28, 4  ;;  %v2431_v40 = vld [vmem:[%s3316_s6 + $0xa0] sm:$0xf] }
  0x4a   : > { %2785 = vmatprep.subr.bf16.mxu1 %v3033_v3  ;;  %v1207_v38 = vrot.slane %v1205_v30, 5  ;;  %v1210_v45 = vshrl.u32 %v2431_v40, 16 }
  0x4b   : > { %v647_v49 = vrot.slane %v645_v42, 5  ;;  %v635_v57 = vrot.slane %v634_v48, 4  ;;  %v653_v0 = vrot.slane %v651_v47, 5  ;;  %v1202_v42 = vor.u32 %v1201_v37, %v1198_v36  ;;  %v3063_v37 = vld [vmem:[%s3742_s1 + $0x1f0] sm:$0xff]  }
  0x4c   : > { %2762 = vmatpush3.bf16.msra.mxu0 %v3032_v60  ;;  %v661_v60 = vrot.slane %v659_v51, 5  ;;  %v1219_v48 = vshll.u32 %v2432_v41, 16  ;;  %v1280_v41 = vshrl.u32 %v2441_v29, 16 }
  0x4d   : > { %2786 = vmatpush3.bf16.msra.mxu1 %v3033_v3  ;;  %2763 = vmatprep.subr.bf16.mxu0 %v3034_v12  ;;  %v648_v58 = vor.u32 %v647_v49, %v644_v46  ;;  %v640_v2 = vsel %vm3387_vm2, %v635_v57, %v639_v44  ;;  %v2434_v44 = vld [vmem:[%s3316_s6 + $0xac] sm:$0x1]  ;;  %v1213_v46 = vshll.u32 %v2431_v40, 16  ;;  %v1224_v49 = vshrl.u32 %v2433_v43, 16 }
  0x4e   : > { %2787 = vmatprep.subr.bf16.mxu1 %v3035_v16  ;;  %v662_v4 = vor.u32 %v661_v60, %v658_v59  ;;  %v2345_v8 = vcombine.low %v626_v63, %v640_v2  ;;  %v1203_v51 = vrot.slane %v1202_v42, 4  ;;  %v1233_v54 = vshll.u32 %v2434_v44, 16  ;;  %v3055_v59 = vld [vmem:[%s3742_s1 + $0x148] sm:$0xff]  }
  0x4f   : > { %v649_v3 = vrot.slane %v648_v58, 4  ;;  %v1215_v53 = vrot.slane %v1213_v46, 5  ;;  %v1226_v57 = vrot.slane %v1224_v49, 4  ;;  %v1229_v58 = vrot.slane %v1227_v50, 5  ;;  %v3066_v49 = vld [vmem:[%s3742_s1 + $0x1a8] sm:$0xff]  }
  0x50   : > { %2764 = vmatpush3.bf16.msra.mxu0 %v3034_v12  ;;  %v663_v9 = vrot.slane %v662_v4, 4  ;;  %v1208_v60 = vsel %vm3387_vm2, %v1203_v51, %v1207_v38  ;;  %v1221_v63 = vrot.slane %v1219_v48, 5  ;;  %v1235_v2 = vrot.slane %v1233_v54, 5 }
  0x51   : > { %2788 = vmatpush3.bf16.msra.mxu1 %v3035_v16  ;;  %2765 = vmatprep.subr.bf16.mxu0 %v3036_v21  ;;  %v654_v11 = vsel %vm3387_vm2, %v649_v3, %v653_v0  ;;  %v3048_v16 = vld [vmem:[%s3742_s1 + $0x120] sm:$0xff]   ;;  %v1275_v40 = vshll.u32 %v2440_v24, 16  ;;  %v1283_v43 = vshll.u32 %v2441_v29, 16  ;;  %v1282_v48 = vrot.slane %v1280_v41, 4  ;;  %v2551_v24 = vld [vmem:[%s3316_s6 + $0x28] sm:$0xf] }
  0x52   : > { %2789 = vmatprep.subr.bf16.mxu1 %v3037_v27  ;;  %v668_v12 = vsel %vm3387_vm2, %v663_v9, %v667_v5  ;;  %v3056_v3 = vld [vmem:[%s3742_s1 + $0x100] sm:$0xff]   ;;  %v3060_v9 = vld [vmem:[%s3742_s1 + $0x1b8] sm:$0xff]   ;;  %v3083_v41 = vld [vmem:[%s3742_s1 + $0x230] sm:$0xff]  }
  0x53   : > { %v2346_v14 = vcombine.low %v654_v11, %v668_v12  ;;  %v3057_v5 = vld [vmem:[%s3742_s1 + $0x140] sm:$0xff]   ;;  %v2436_v11 = vld [vmem:[%s3316_s6 + $0xb4] sm:$0x1]  ;;  %v2437_v12 = vld [vmem:[%s3316_s6 + $0xb8] sm:$0xf]  ;;  %v1277_v51 = vrot.slane %v1275_v40, 5 }
  0x54   : > { %2766 = vmatpush3.bf16.msra.mxu0 %v3036_v21  ;;  %v2427_v21 = vld [vmem:[%s3316_s6 + $0x90] sm:$0xf] }
  0x55   : > { %2790 = vmatpush3.bf16.msra.mxu1 %v3037_v27  ;;  %2799 = vmatprep.subr.bf16.mxu0 %v3039_v52  ;;  %v1182_v25 = vshrl.u32 %v2427_v21, 16  ;;  %v1185_v26 = vshll.u32 %v2427_v21, 16  ;;  %v1191_v27 = vshll.u32 %v2428_v22, 16  ;;  %v1252_v21 = vshrl.u32 %v2437_v12, 16 }
  0x56   : > { %2823 = vmatprep.subr.bf16.mxu1 %v3040_v55  ;;  %v1255_v22 = vshll.u32 %v2437_v12, 16  ;;  %v3076_v12 = vld [vmem:[%s3742_s1 + $0x180] sm:$0xff]  }
  0x57   : > { %2768 = vmatmul.mubr.bf16.vlgmr.msra.gmra.mxu0 %v2344_v62  ;;  %v1184_v32 = vrot.slane %v1182_v25, 4  ;;  %v1187_v33 = vrot.slane %v1185_v26, 5  ;;  %v1193_v35 = vrot.slane %v1191_v27, 5 }
  0x58   : > { %2792 = vmatmul.mubr.bf16.vlgmr.msra.gmra.mxu1 %v3041_v56  ;;  %2800 = vmatpush3.bf16.msra.mxu0 %v3039_v52  ;;  %v1212_v52 = vrot.slane %v1210_v45, 4  ;;  %v3064_v45 = vld [vmem:[%s3316_s6 + $0xf8] ss:$8 sps:$4 sm:$0xff]  }
  0x59   : > { %2824 = vmatpush3.bf16.msra.mxu1 %v3040_v55  ;;  %2801 = vmatprep.subr.bf16.mxu0 %v3042_v1  ;;  %v1188_v39 = vor.u32 %v1187_v33, %v1184_v32  ;;  %v3054_v55 = vld [vmem:[%s3742_s1 + $0x108] sm:$0xff]   ;;  %v1254_v32 = vrot.slane %v1252_v21, 4  ;;  %v1257_v33 = vrot.slane %v1255_v22, 5  ;;  %v3079_v21 = vld [vmem:[%s3316_s6 + $0x18] ss:$8 sps:$4 sm:$0xff]  }
  0x5a   : > { %2825 = vmatprep.subr.bf16.mxu1 %v3043_v7  ;;  %2771 = vmatprep.mubr.bf16.mxu0 %v2345_v8  ;;  %v1216_v62 = vor.u32 %v1215_v53, %v1212_v52  ;;  %v2435_v8 = vld [vmem:[%s3316_s6 + $0xb0] sm:$0xf]  ;;  %v1285_v52 = vrot.slane %v1283_v43, 5  ;;  %v3081_v22 = vld [vmem:[%s3742_s1 + $0x238] sm:$0xff]  }
  0x5b   : > { %2795 = vmatprep.mubr.bf16.mxu1 %v3046_v6  ;;  %v1189_v47 = vrot.slane %v1188_v39, 4  ;;  %v1258_v42 = vor.u32 %v1257_v33, %v1254_v32  ;;  %v2554_v33 = vld [vmem:[%s3316_s6 + $0x34] sm:$0x1] }
  0x5c   : > { %2802 = vmatpush3.bf16.msra.mxu0 %v3042_v1  ;;  %v1230_v1 = vor.u32 %v1229_v58, %v1226_v57  ;;  %v1217_v4 = vrot.slane %v1216_v62, 4  ;;  %v1286_v58 = vor.u32 %v1285_v52, %v1282_v48 }
  0x5d   : > { %2826 = vmatpush3.bf16.msra.mxu1 %v3043_v7  ;;  %2803 = vmatprep.subr.bf16.mxu0 %v3044_v10  ;;  %v1194_v56 = vsel %vm3387_vm2, %v1189_v47, %v1193_v35  ;;  %v2442_v35 = vld [vmem:[%s3316_s6 + $0xcc] sm:$0x1]  ;;  %v1259_v50 = vrot.slane %v1258_v42, 4 }
  0x5e   : > { %2827 = vmatprep.subr.bf16.mxu1 %v3045_v13  ;;  %v2459_v0 = vcombine.low %v1194_v56, %v1208_v60  ;;  %v1231_v6 = vrot.slane %v1230_v1, 4  ;;  %v1222_v7 = vsel %vm3387_vm2, %v1217_v4, %v1221_v63  ;;  %v1289_v44 = vshll.u32 %v2442_v35, 16  ;;  %v3065_v56 = vld [vmem:[%s3316_s6 + $0x108] ss:$8 sps:$4 sm:$0xff]   ;;  %v3068_v1 = vld [vmem:[%s3742_s1 + $0x1a0] sm:$0xff]  }
  0x5f   : > { %2772 = vmatmul.mubr.bf16.gmra.mxu0 %v2346_v14  ;;  %v3061_v14 = vld [vmem:[%s3742_s1 + $0x1f8] sm:$0xff]   ;;  %v1287_v63 = vrot.slane %v1286_v58, 4  ;;  %v3078_v4 = vld [vmem:[%s3316_s6 + $0x8] ss:$8 sps:$4 sm:$0xff]   ;;  %v1865_v35 = vshll.u32 %v2551_v24, 16 }
  0x60   : > { %2804 = vmatpush3.bf16.msra.mxu0 %v3044_v10  ;;  %2796 = vmatmul.mubr.bf16.gmra.mxu1 %v3047_v15  ;;  %v1236_v10 = vsel %vm3387_vm2, %v1231_v6, %v1235_v2  ;;  %v3080_v6 = vld [vmem:[%s3316_s6 + $0x50] ss:$8 sps:$4 sm:$0xff]   ;;  %v3086_v58 = vld [vmem:[%s3742_s1 + $0x228] sm:$0xff]  }
  0x61   : > { %2828 = vmatpush3.bf16.msra.mxu1 %v3045_v13  ;;  %2805 = vmatprep.subr.bf16.mxu0 %v3048_v16  ;;  %v2438_v13 = vld [vmem:[%s3316_s6 + $0xbc] sm:$0x1]  ;;  %v2460_v15 = vcombine.low %v1222_v7, %v1236_v10  ;;  %v3074_v10 = vld [vmem:[%s3742_s1 + $0x188] sm:$0xff]  }
  0x62   : > { %2829 = vmatprep.subr.bf16.mxu1 %v3049_v17  ;;  %2815 = vmatprep.mubr.bf16.mxu0 %v3058_v19  ;;  %v2439_v19 = vld [vmem:[%s3316_s6 + $0xc0] sm:$0xf]  ;;  %v1261_v23 = vshll.u32 %v2438_v13, 16  ;;  %v3071_v7 = vld [vmem:[%s3742_s1 + $0x1d8] sm:$0xff]  }
  0x63   : > { %2839 = vmatprep.mubr.bf16.mxu1 %v2459_v0  ;;  %v1266_v25 = vshrl.u32 %v2439_v19, 16  ;;  %v1269_v30 = vshll.u32 %v2439_v19, 16  ;;  %v3077_v13 = vld [vmem:[%s3742_s1 + $0x1c0] sm:$0xff]  }
  0x64   : > { %2806 = vmatpush3.bf16.msra.mxu0 %v3048_v16  ;;  %v1238_v16 = vshrl.u32 %v2435_v8, 16 }
  0x65   : > { %2830 = vmatpush3.bf16.msra.mxu1 %v3049_v17  ;;  %2807 = vmatprep.subr.bf16.mxu0 %v3050_v18  ;;  %v1241_v17 = vshll.u32 %v2435_v8, 16  ;;  %v1268_v36 = vrot.slane %v1266_v25, 4  ;;  %v1271_v39 = vrot.slane %v1269_v30, 5  ;;  %v3072_v8 = vld [vmem:[%s3742_s1 + $0x190] sm:$0xff]   ;;  %v2552_v25 = vld [vmem:[%s3316_s6 + $0x2c] sm:$0x1] }
  0x66   : > { %2831 = vmatprep.subr.bf16.mxu1 %v3051_v20  ;;  %v1240_v26 = vrot.slane %v1238_v16, 4  ;;  %v2545_v16 = vld [vmem:[%s3316_s6 + $0x10] sm:$0xf] }
  0x67   : > { %v1243_v27 = vrot.slane %v1241_v17, 5  ;;  %v1272_v47 = vor.u32 %v1271_v39, %v1268_v36  ;;  %v2546_v17 = vld [vmem:[%s3316_s6 + $0x14] sm:$0x1]  ;;  %v2553_v30 = vld [vmem:[%s3316_s6 + $0x30] sm:$0xf] }
  0x68   : > { %2808 = vmatpush3.bf16.msra.mxu0 %v3050_v18  ;;  %v1247_v18 = vshll.u32 %v2436_v11, 16  ;;  %v3075_v11 = vld [vmem:[%s3742_s1 + $0x1c8] sm:$0xff]   ;;  %v1829_v32 = vshll.u32 %v2546_v17, 16  ;;  %v1876_v39 = vshrl.u32 %v2553_v30, 16  ;;  %v1879_v40 = vshll.u32 %v2553_v30, 16 }
  0x69   : > { %2832 = vmatpush3.bf16.msra.mxu1 %v3051_v20  ;;  %2809 = vmatprep.subr.bf16.mxu0 %v3052_v31  ;;  %v3059_v20 = vld [vmem:[%s3316_s6 + $0xe8] ss:$8 sps:$4 sm:$0xff]   ;;  %v1244_v38 = vor.u32 %v1243_v27, %v1240_v26  ;;  %v1273_v54 = vrot.slane %v1272_v47, 4 }
  0x6a   : > { %2833 = vmatprep.subr.bf16.mxu1 %v3053_v34  ;;  %v1249_v28 = vrot.slane %v1247_v18, 5  ;;  %v3082_v36 = vld [vmem:[%s3316_s6 + $0x60] ss:$8 sps:$4 sm:$0xff]   ;;  %v1878_v48 = vrot.slane %v1876_v39, 4 }
  0x6b   : > { %v1245_v46 = vrot.slane %v1244_v38, 4  ;;  %v1278_v62 = vsel %vm3387_vm2, %v1273_v54, %v1277_v51  ;;  %v1871_v38 = vshll.u32 %v2552_v25, 16 }
  0x6c   : > { %2810 = vmatpush3.bf16.msra.mxu0 %v3052_v31  ;;  %v3062_v31 = vld [vmem:[%s3742_s1 + $0x1b0] sm:$0xff]  }
  0x6d   : > { %2834 = vmatpush3.bf16.msra.mxu1 %v3053_v34  ;;  %2811 = vmatprep.subr.bf16.mxu0 %v3054_v55  ;;  %v1263_v34 = vrot.slane %v1261_v23, 5  ;;  %v1250_v53 = vsel %vm3387_vm2, %v1245_v46, %v1249_v28  ;;  %v1823_v23 = vshll.u32 %v2545_v16, 16  ;;  %v3084_v46 = vld [vmem:[%s3316_s6 + $0x28] ss:$8 sps:$4 sm:$0xff]  }
  0x6e   : > { %2835 = vmatprep.subr.bf16.mxu1 %v3055_v59 }
  0x6f   : > { %v1264_v57 = vsel %vm3387_vm2, %v1259_v50, %v1263_v34  ;;  %v1862_v34 = vshrl.u32 %v2551_v24, 16  ;;  %v3087_v50 = vld [vmem:[%s3316_s6 + $0x70] ss:$8 sps:$4 sm:$0xff]  }
  0x70   : > { %2812 = vmatpush3.bf16.msra.mxu0 %v3054_v55  ;;  %v1291_v55 = vrot.slane %v1289_v44, 5  ;;  %v2461_v60 = vcombine.low %v1250_v53, %v1264_v57  ;;  %v1867_v44 = vrot.slane %v1865_v35, 5  ;;  %v1831_v53 = vrot.slane %v1829_v32, 5  ;;  %v2558_v32 = vld [vmem:[%s3316_s6 + $0x44] sm:$0x1] }
  0x71   : > { %2836 = vmatpush3.bf16.msra.mxu1 %v3055_v59  ;;  %2813 = vmatprep.subr.bf16.mxu0 %v3056_v3  ;;  %v3067_v59 = vld [vmem:[%s3742_s1 + $0x1e8] sm:$0xff]   ;;  %v1864_v43 = vrot.slane %v1862_v34, 4 }
  0x72   : > { %2837 = vmatprep.subr.bf16.mxu1 %v3057_v5  ;;  %v1292_v0 = vsel %vm3387_vm2, %v1287_v63, %v1291_v55  ;;  %v1873_v55 = vrot.slane %v1871_v38, 5 }
  0x73   : > { %v2462_v2 = vcombine.low %v1278_v62, %v1292_v0  ;;  %v1868_v54 = vor.u32 %v1867_v44, %v1864_v43  ;;  %v3085_v62 = vld [vmem:[%s3316_s6 + $0x38] ss:$8 sps:$4 sm:$0xff]  }
  0x74   : > { %2814 = vmatpush3.bf16.msra.mxu0 %v3056_v3  ;;  %v3069_v3 = vld [vmem:[%s3742_s1 + $0x1e0] sm:$0xff]  }
  0x75   : > { %2838 = vmatpush3.bf16.msra.mxu1 %v3057_v5  ;;  %2847 = vmatprep.subr.bf16.mxu0 %v3060_v9  ;;  %v3070_v5 = vld [vmem:[%s3742_s1 + $0x198] sm:$0xff]  }
  0x76   : > { %2871 = vmatprep.subr.bf16.mxu1 %v3061_v14 }
  0x77   : > { %2816 = vmatmul.mubr.bf16.vlgmr.msra.gmra.mxu0 %v3059_v20  ;;  %v1820_v20 = vshrl.u32 %v2545_v16, 16 }
  0x78   : > { %2840 = vmatmul.mubr.bf16.vlgmr.msra.gmra.mxu1 %v2460_v15  ;;  %2848 = vmatpush3.bf16.msra.mxu0 %v3060_v9  ;;  %v3073_v9 = vld [vmem:[%s3742_s1 + $0x1d0] sm:$0xff]   ;;  %v2544_v15 = vld [vmem:[%s3316_s6 + $0xc] sm:$0x1] }
  0x79   : > { %2872 = vmatpush3.bf16.msra.mxu1 %v3061_v14  ;;  %2849 = vmatprep.subr.bf16.mxu0 %v3062_v31  ;;  %v2543_v14 = vld [vmem:[%s3316_s6 + $0x8] sm:$0xf]  ;;  %v1815_v28 = vshll.u32 %v2544_v15, 16  ;;  %v1822_v29 = vrot.slane %v1820_v20, 4  ;;  %v3090_v15 = vld [vmem:[%s3742_s1 + $0x218] sm:$0xff]   ;;  %v3091_v20 = vld [vmem:[%s3742_s1 + $0x210] sm:$0xff]  }
  0x7a   : > { %2873 = vmatprep.subr.bf16.mxu1 %v3063_v37  ;;  %2819 = vmatprep.mubr.bf16.mxu0 %v3064_v45  ;;  %v1806_v18 = vshrl.u32 %v2543_v14, 16  ;;  %v1809_v19 = vshll.u32 %v2543_v14, 16  ;;  %v1885_v45 = vshll.u32 %v2554_v33, 16 }
  0x7b   : > { %2843 = vmatprep.mubr.bf16.mxu1 %v2461_v60  ;;  %v1817_v47 = vrot.slane %v1815_v28, 5 }
  0x7c   : > { %2850 = vmatpush3.bf16.msra.mxu0 %v3062_v31  ;;  %v1808_v26 = vrot.slane %v1806_v18, 4  ;;  %v1811_v27 = vrot.slane %v1809_v19, 5  ;;  %v1825_v31 = vrot.slane %v1823_v23, 5  ;;  %v1887_v57 = vrot.slane %v1885_v45, 5 }
  0x7d   : > { %2874 = vmatpush3.bf16.msra.mxu1 %v3063_v37  ;;  %2851 = vmatprep.subr.bf16.mxu0 %v3066_v49 }
  0x7e   : > { %2875 = vmatprep.subr.bf16.mxu1 %v3067_v59  ;;  %v1812_v37 = vor.u32 %v1811_v27, %v1808_v26  ;;  %v1826_v42 = vor.u32 %v1825_v31, %v1822_v29  ;;  %v2550_v26 = vld [vmem:[%s3316_s6 + $0x24] sm:$0x1]  ;;  %v2556_v31 = vld [vmem:[%s3316_s6 + $0x3c] sm:$0x1] }
  0x7f   : > { %2820 = vmatmul.mubr.bf16.gmra.mxu0 %v3065_v56  ;;  %v1899_v39 = vshll.u32 %v2556_v31, 16 }
  0x80   : > { %2852 = vmatpush3.bf16.msra.mxu0 %v3066_v49  ;;  %2844 = vmatmul.mubr.bf16.gmra.mxu1 %v2462_v2  ;;  %v1881_v49 = vrot.slane %v1879_v40, 5  ;;  %v1813_v51 = vrot.slane %v1812_v37, 4  ;;  %v1827_v52 = vrot.slane %v1826_v42, 4  ;;  %v3092_v37 = vld [vmem:[%s3742_s1 + $0x208] sm:$0xff]  }
  0x81   : > { %2876 = vmatpush3.bf16.msra.mxu1 %v3067_v59  ;;  %2853 = vmatprep.subr.bf16.mxu0 %v3068_v1  ;;  %v1869_v59 = vrot.slane %v1868_v54, 4 }
  0x82   : > { %2877 = vmatprep.subr.bf16.mxu1 %v3069_v3  ;;  %2863 = vmatprep.mubr.bf16.mxu0 %v3078_v4  ;;  %v1882_v56 = vor.u32 %v1881_v49, %v1878_v48  ;;  %v1818_v63 = vsel %vm3387_vm2, %v1813_v51, %v1817_v47  ;;  %v1832_v0 = vsel %vm3387_vm2, %v1827_v52, %v1831_v53  ;;  %v3089_v4 = vld [vmem:[%s3742_s1 + $0x220] sm:$0xff]   ;;  %v1901_v48 = vrot.slane %v1899_v39, 5 }
  0x83   : > { %2887 = vmatprep.mubr.bf16.mxu1 %v3080_v6  ;;  %v1874_v2 = vsel %vm3387_vm2, %v1869_v59, %v1873_v55  ;;  %v2549_v6 = vld [vmem:[%s3316_s6 + $0x20] sm:$0xf] }
  0x84   : > { %2854 = vmatpush3.bf16.msra.mxu0 %v3068_v1  ;;  %v1883_v60 = vrot.slane %v1882_v56, 4  ;;  %v3088_v1 = vld [vmem:[%s3316_s6 + $0x80] ss:$8 sps:$4 sm:$0xff]   ;;  %v1851_v14 = vshll.u32 %v2549_v6, 16 }
  0x85   : > { %2878 = vmatpush3.bf16.msra.mxu1 %v3069_v3  ;;  %2855 = vmatprep.subr.bf16.mxu0 %v3070_v5 }
  0x86   : > { %2879 = vmatprep.subr.bf16.mxu1 %v3071_v7  ;;  %v1888_v3 = vsel %vm3387_vm2, %v1883_v60, %v1887_v57  ;;  %v1853_v25 = vrot.slane %v1851_v14, 5 }
  0x88   : > { %2856 = vmatpush3.bf16.msra.mxu0 %v3070_v5  ;;  %v2547_v5 = vld [vmem:[%s3316_s6 + $0x18] sm:$0xf] }
  0x89   : > { %2880 = vmatpush3.bf16.msra.mxu1 %v3071_v7  ;;  %2857 = vmatprep.subr.bf16.mxu0 %v3072_v8  ;;  %v2575_v7 = vcombine.low %v1818_v63, %v1832_v0 }
  0x8a   : > { %2881 = vmatprep.subr.bf16.mxu1 %v3073_v9 }
  0x8c   : > { %2858 = vmatpush3.bf16.msra.mxu0 %v3072_v8  ;;  %v2555_v8 = vld [vmem:[%s3316_s6 + $0x38] sm:$0xf] }
  0x8d   : > { %2882 = vmatpush3.bf16.msra.mxu1 %v3073_v9  ;;  %2859 = vmatprep.subr.bf16.mxu0 %v3074_v10  ;;  %v2557_v9 = vld [vmem:[%s3316_s6 + $0x40] sm:$0xf]  ;;  %v1890_v16 = vshrl.u32 %v2555_v8, 16  ;;  %v1893_v17 = vshll.u32 %v2555_v8, 16 }
  0x8e   : > { %2883 = vmatprep.subr.bf16.mxu1 %v3075_v11  ;;  %v1904_v18 = vshrl.u32 %v2557_v9, 16  ;;  %v1907_v19 = vshll.u32 %v2557_v9, 16 }
  0x8f   : > { %v1892_v27 = vrot.slane %v1890_v16, 4  ;;  %v1895_v28 = vrot.slane %v1893_v17, 5 }
  0x90   : > { %2860 = vmatpush3.bf16.msra.mxu0 %v3074_v10  ;;  %v2577_v10 = vcombine.low %v1874_v2, %v1888_v3  ;;  %v1906_v29 = vrot.slane %v1904_v18, 4  ;;  %v1909_v30 = vrot.slane %v1907_v19, 5 }
  0x91   : > { %2884 = vmatpush3.bf16.msra.mxu1 %v3075_v11  ;;  %2861 = vmatprep.subr.bf16.mxu0 %v3076_v12  ;;  %v1834_v11 = vshrl.u32 %v2547_v5, 16  ;;  %v1896_v38 = vor.u32 %v1895_v28, %v1892_v27 }
  0x92   : > { %2885 = vmatprep.subr.bf16.mxu1 %v3077_v13  ;;  %v1910_v40 = vor.u32 %v1909_v30, %v1906_v29 }
  0x93   : > { %v1897_v47 = vrot.slane %v1896_v38, 4 }
  0x94   : > { %2862 = vmatpush3.bf16.msra.mxu0 %v3076_v12  ;;  %v1837_v12 = vshll.u32 %v2547_v5, 16  ;;  %v1911_v49 = vrot.slane %v1910_v40, 4 }
  0x95   : > { %2886 = vmatpush3.bf16.msra.mxu1 %v3077_v13  ;;  %2895 = vmatprep.subr.bf16.mxu0 %v3081_v22  ;;  %v1848_v13 = vshrl.u32 %v2549_v6, 16  ;;  %v1902_v53 = vsel %vm3387_vm2, %v1897_v47, %v1901_v48 }
  0x96   : > { %2919 = vmatprep.subr.bf16.mxu1 %v3081_v22  ;;  %v1839_v23 = vrot.slane %v1837_v12, 5 }
  0x97   : > { %2864 = vmatmul.mubr.bf16.vlgmr.msra.gmra.mxu0 %v3079_v21  ;;  %v2548_v21 = vld [vmem:[%s3316_s6 + $0x1c] sm:$0x1]  ;;  %v1850_v24 = vrot.slane %v1848_v13, 4 }
  0x98   : > { %2888 = vmatmul.mubr.bf16.vlgmr.msra.gmra.mxu1 %v3082_v36  ;;  %2896 = vmatpush3.bf16.msra.mxu0 %v3081_v22  ;;  %v1843_v34 = vshll.u32 %v2548_v21, 16  ;;  %v1857_v36 = vshll.u32 %v2550_v26, 16 }
  0x99   : > { %2927 = vmatpush3.bf16.msra.mxu1 %v3081_v22  ;;  %2897 = vmatprep.subr.bf16.mxu0 %v3083_v41  ;;  %v1836_v22 = vrot.slane %v1834_v11, 4  ;;  %v1854_v35 = vor.u32 %v1853_v25, %v1850_v24 }
  0x9a   : > { %2920 = vmatprep.subr.bf16.mxu1 %v3083_v41  ;;  %2867 = vmatprep.mubr.bf16.mxu0 %v3084_v46  ;;  %v1845_v43 = vrot.slane %v1843_v34, 5  ;;  %v1859_v45 = vrot.slane %v1857_v36, 5  ;;  %v3093_v46 = vld [vmem:[%s3742_s1 + $0x200] sm:$0xff]  }
  0x9b   : > { %2891 = vmatprep.mubr.bf16.mxu1 %v3087_v50  ;;  %v1840_v33 = vor.u32 %v1839_v23, %v1836_v22  ;;  %v1855_v44 = vrot.slane %v1854_v35, 4 }
  0x9c   : > { %2898 = vmatpush3.bf16.msra.mxu0 %v3083_v41 }
  0x9d   : > { %2928 = vmatpush3.bf16.msra.mxu1 %v3083_v41  ;;  %2899 = vmatprep.subr.bf16.mxu0 %v3086_v58  ;;  %v1913_v41 = vshll.u32 %v2558_v32, 16  ;;  %v1841_v42 = vrot.slane %v1840_v33, 4  ;;  %v1860_v52 = vsel %vm3387_vm2, %v1855_v44, %v1859_v45 }
  0x9e   : > { %2921 = vmatprep.subr.bf16.mxu1 %v3086_v58 }
  0x9f   : > { %2868 = vmatmul.mubr.bf16.gmra.mxu0 %v3085_v62  ;;  %v1915_v50 = vrot.slane %v1913_v41, 5  ;;  %v1846_v51 = vsel %vm3387_vm2, %v1841_v42, %v1845_v43 }
  0xa0   : > { %2900 = vmatpush3.bf16.msra.mxu0 %v3086_v58  ;;  %2892 = vmatmul.mubr.bf16.gmra.mxu1 %v3088_v1  ;;  %v2576_v55 = vcombine.low %v1846_v51, %v1860_v52 }
  0xa1   : > { %2929 = vmatpush3.bf16.msra.mxu1 %v3086_v58  ;;  %2901 = vmatprep.subr.bf16.mxu0 %v3089_v4  ;;  %v1916_v54 = vsel %vm3387_vm2, %v1911_v49, %v1915_v50 }
  0xa2   : > { %2922 = vmatprep.subr.bf16.mxu1 %v3089_v4  ;;  %2911 = vmatprep.mubr.bf16.mxu0 %v2575_v7  ;;  %v2578_v56 = vcombine.low %v1902_v53, %v1916_v54 }
  0xa3   : > { %2915 = vmatprep.mubr.bf16.mxu1 %v2577_v10 }
  0xa4   : > { %2902 = vmatpush3.bf16.msra.mxu0 %v3089_v4 }
  0xa5   : > { %2930 = vmatpush3.bf16.msra.mxu1 %v3089_v4  ;;  %2903 = vmatprep.subr.bf16.mxu0 %v3090_v15 }
  0xa6   : > { %2923 = vmatprep.subr.bf16.mxu1 %v3090_v15 }
  0xa8   : > { %2904 = vmatpush3.bf16.msra.mxu0 %v3090_v15 }
  0xa9   : > { %2931 = vmatpush3.bf16.msra.mxu1 %v3090_v15  ;;  %2905 = vmatprep.subr.bf16.mxu0 %v3091_v20 }
  0xaa   : > { %2924 = vmatprep.subr.bf16.mxu1 %v3091_v20 }
  0xac   : > { %2906 = vmatpush3.bf16.msra.mxu0 %v3091_v20 }
  0xad   : > { %2932 = vmatpush3.bf16.msra.mxu1 %v3091_v20  ;;  %2907 = vmatprep.subr.bf16.mxu0 %v3092_v37 }
  0xae   : > { %2925 = vmatprep.subr.bf16.mxu1 %v3092_v37 }
  0xb0   : > { %2908 = vmatpush3.bf16.msra.mxu0 %v3092_v37 }
  0xb1   : > { %2933 = vmatpush3.bf16.msra.mxu1 %v3092_v37  ;;  %2909 = vmatprep.subr.bf16.mxu0 %v3093_v46 }
  0xb2   : > { %2926 = vmatprep.subr.bf16.mxu1 %v3093_v46 }
  0xb4   : > { %2910 = vmatpush3.bf16.msra.mxu0 %v3093_v46 }
  0xb5   : > { %2934 = vmatpush3.bf16.msra.mxu1 %v3093_v46 }
  0xb7   : > { %2912 = vmatmul.mubr.bf16.vlgmr.msra.gmra.mxu0 %v2576_v55 }
  0xb8   : > { %2916 = vmatmul.mubr.bf16.vlgmr.msra.gmra.mxu1 %v2578_v56 }
  0xf7   : > { %v2721_v57 = vpop.f32.mrf.mxu0 }
  0xf8   : > { %v2745_v58 = vpop.f32.mrf.mxu1 }
  0xf9   : > { %v370_v59 = vpop.f32.mrf.mxu0  ;;  %v516_v47 = vadd.f32 %v2745_v58, %v2721_v57 }
  0xfa   : > { %v507_v60 = vpop.f32.mrf.mxu1 }
  0xfb   : > { %v2722_v62 = vpop.f32.mrf.mxu0  ;;  %v508_v50 = vadd.f32 %v507_v60, %v370_v59 }
  0xfc   : > { %v2746_v63 = vpop.f32.mrf.mxu1 }
  0xfd   : > { %v373_v0 = vpop.f32.mrf.mxu0  ;;  %v519_v55 = vadd.f32 %v2746_v63, %v2722_v62 }
  0xfe   : > { %v510_v1 = vpop.f32.mrf.mxu1 }
  0xff   : > { %v2725_v2 = vpop.f32.mrf.mxu0 }
 0x100   : > { %v2749_v3 = vpop.f32.mrf.mxu1 }
 0x101   : > { %v386_v4 = vpop.f32.mrf.mxu0  ;;  %v532_v48 = vadd.f32 %v2749_v3, %v2725_v2 }
 0x102   : > { %v523_v61 = vpop.f32.mrf.mxu1 }
 0x103   : > { %v2726_v5 = vpop.f32.mrf.mxu0  ;;  %v524_v53 = vadd.f32 %v523_v61, %v386_v4 }
 0x104   : > { %v2750_v6 = vpop.f32.mrf.mxu1 }
 0x105   : > { %v389_v7 = vpop.f32.mrf.mxu0 }
 0x106   : > { %v526_v8 = vpop.f32.mrf.mxu1 }
 0x107   : > { %v527_v58 = vadd.f32 %v526_v8, %v389_v7 }
 0x117   : > { %v2769_v9 = vpop.f32.mrf.mxu0 }
 0x118   : > { %v2793_v10 = vpop.f32.mrf.mxu1  ;;  %v817_v51 = vadd.f32 %v2769_v9, %v516_v47 }
 0x119   : > { %v784_v11 = vpop.f32.mrf.mxu0 }
 0x11a   : > { %v955_v12 = vpop.f32.mrf.mxu1  ;;  %v815_v56 = vadd.f32 %v784_v11, %v508_v50 }
 0x11b   : > { %v2770_v13 = vpop.f32.mrf.mxu0 }
 0x11c   : > { %v2794_v14 = vpop.f32.mrf.mxu1  ;;  %v986_v59 = vadd.f32 %v955_v12, %v815_v56 }
 0x11d   : > { %v787_v15 = vpop.f32.mrf.mxu0 }
 0x11e   : > { %v3633_v16 = vpop.f32.mrf.mxu1 }
 0x11f   : > { %3749 = vst [vmem:[#allocation8_spill] sm:$0xff] %v3633_v16  ;;  %v2773_v17 = vpop.f32.mrf.mxu0  ;;  %v511_v16 = vadd.f32 %v510_v1, %v373_v0 }
 0x120   : > { %v2797_v18 = vpop.f32.mrf.mxu1  ;;  %v821_v54 = vadd.f32 %v2773_v17, %v532_v48 }
 0x121   : > { %v800_v19 = vpop.f32.mrf.mxu0  ;;  %v816_v60 = vadd.f32 %v787_v15, %v511_v16 }
 0x122   : > { %v971_v20 = vpop.f32.mrf.mxu1  ;;  %v992_v2 = vadd.f32 %v2797_v18, %v821_v54 }
 0x123   : > { %v2774_v21 = vpop.f32.mrf.mxu0 }
 0x124   : > { %v2798_v22 = vpop.f32.mrf.mxu1 }
 0x125   : > { %v803_v23 = vpop.f32.mrf.mxu0 }
 0x126   : > { %v974_v24 = vpop.f32.mrf.mxu1  ;;  %v3756_v0 = vld [vmem:[#allocation8_spill] sm:$0xff] }
 0x127   : > { %v987_v1 = vadd.f32 %v3756_v0, %v816_v60 }
 0x137   : > { %v2817_v25 = vpop.f32.mrf.mxu0 }
 0x138   : > { %v2841_v26 = vpop.f32.mrf.mxu1 }
 0x139   : > { %v1126_v27 = vpop.f32.mrf.mxu0 }
 0x13a   : > { %v1408_v28 = vpop.f32.mrf.mxu1  ;;  %v1157_v63 = vadd.f32 %v1126_v27, %v986_v59 }
 0x13b   : > { %v2818_v29 = vpop.f32.mrf.mxu0 }
 0x13c   : > { %v3635_v30 = vpop.f32.mrf.mxu1  ;;  %v1439_v15 = vadd.f32 %v1408_v28, %v1157_v63 }
 0x13d   : > { %3750 = vst [vmem:[#allocation9_spill] sm:$0xff] %v3635_v30  ;;  %v1129_v31 = vpop.f32.mrf.mxu0 }
 0x13e   : > { %v3637_v32 = vpop.f32.mrf.mxu1  ;;  %v1158_v16 = vadd.f32 %v1129_v31, %v987_v1 }
 0x13f   : > { %3751 = vst [vmem:[#allocation10_spill] sm:$0xff] %v3637_v32  ;;  %v2821_v33 = vpop.f32.mrf.mxu0  ;;  %v819_v32 = vadd.f32 %v800_v19, %v524_v53 }
 0x140   : > { %v2845_v34 = vpop.f32.mrf.mxu1  ;;  %v1163_v4 = vadd.f32 %v2821_v33, %v992_v2 }
 0x141   : > { %v1142_v35 = vpop.f32.mrf.mxu0  ;;  %v990_v47 = vadd.f32 %v971_v20, %v819_v32 }
 0x142   : > { %v1424_v36 = vpop.f32.mrf.mxu1  ;;  %v1445_v8 = vadd.f32 %v2845_v34, %v1163_v4 }
 0x143   : > { %v2822_v37 = vpop.f32.mrf.mxu0  ;;  %v1161_v11 = vadd.f32 %v1142_v35, %v990_v47 }
 0x144   : > { %v2846_v38 = vpop.f32.mrf.mxu1 }
 0x145   : > { %v1145_v39 = vpop.f32.mrf.mxu0 }
 0x146   : > { %v3639_v40 = vpop.f32.mrf.mxu1 }
 0x147   : > { %3752 = vst [vmem:[#allocation11_spill] sm:$0xff] %v3639_v40  ;;  %v535_v40 = vadd.f32 %v2750_v6, %v2726_v5 }
 0x149   : > { %v822_v3 = vadd.f32 %v2774_v21, %v535_v40 }
 0x14b   : > { %v993_v6 = vadd.f32 %v2798_v22, %v822_v3  ;;  %v3757_v22 = vld [vmem:[#allocation9_spill] sm:$0xff] }
 0x14d   : > { %v1164_v17 = vadd.f32 %v2822_v37, %v993_v6 }
 0x14e   : > { %v3759_v37 = vld [vmem:[#allocation11_spill] sm:$0xff] }
 0x157   : > { %v2865_v41 = vpop.f32.mrf.mxu0 }
 0x158   : > { %v2889_v42 = vpop.f32.mrf.mxu1 }
 0x159   : > { %v1579_v43 = vpop.f32.mrf.mxu0 }
 0x15a   : > { %v3641_v44 = vpop.f32.mrf.mxu1 }
 0x15b   : > { %3753 = vst [vmem:[#allocation12_spill] sm:$0xff] %v3641_v44  ;;  %v2866_v45 = vpop.f32.mrf.mxu0  ;;  %v988_v44 = vadd.f32 %v2793_v10, %v817_v51 }
 0x15c   : > { %v3643_v46 = vpop.f32.mrf.mxu1 }
 0x15d   : > { %3754 = vst [vmem:[#allocation13_spill] sm:$0xff] %v3643_v46  ;;  %v1582_v49 = vpop.f32.mrf.mxu0  ;;  %v818_v46 = vadd.f32 %v2770_v13, %v519_v55  ;;  %v1159_v9 = vadd.f32 %v2817_v25, %v988_v44  ;;  %v1610_v25 = vadd.f32 %v1579_v43, %v1439_v15 }
 0x15e   : > { %v3645_v52 = vpop.f32.mrf.mxu1 }
 0x15f   : > { %3755 = vst [vmem:[#allocation14_spill] sm:$0xff] %v3645_v52  ;;  %v2869_v30 = vpop.f32.mrf.mxu0  ;;  %v820_v52 = vadd.f32 %v803_v23, %v527_v58  ;;  %v989_v62 = vadd.f32 %v2794_v14, %v818_v46  ;;  %v1441_v10 = vadd.f32 %v2841_v26, %v1159_v9  ;;  %v1443_v14 = vadd.f32 %v1424_v36, %v1161_v11 }
 0x160   : > { %v2893_v57 = vpop.f32.mrf.mxu1  ;;  %v1616_v21 = vadd.f32 %v2869_v30, %v1445_v8  ;;  %v1446_v26 = vadd.f32 %v2846_v38, %v1164_v17 }
 0x161   : > { %v1595_v61 = vpop.f32.mrf.mxu0  ;;  %v1160_v13 = vadd.f32 %v2818_v29, %v989_v62  ;;  %v991_v7 = vadd.f32 %v974_v24, %v820_v52  ;;  %v1612_v18 = vadd.f32 %v2865_v41, %v1441_v10  ;;  %v3758_v29 = vld [vmem:[#allocation10_spill] sm:$0xff] }
 0x162   : > { %v1766_v5 = vpop.f32.mrf.mxu1  ;;  %v1614_v27 = vadd.f32 %v1595_v61, %v1443_v14  ;;  %v1440_v32 = vadd.f32 %v3758_v29, %v1158_v16  ;;  %v1787_v31 = vadd.f32 %v2893_v57, %v1616_v21  ;;  %v3760_v36 = vld [vmem:[#allocation12_spill] sm:$0xff] }
 0x163   : > { %v2870_v12 = vpop.f32.mrf.mxu0  ;;  %v1162_v20 = vadd.f32 %v1145_v39, %v991_v7  ;;  %v1442_v23 = vadd.f32 %v3757_v22, %v1160_v13  ;;  %v1783_v33 = vadd.f32 %v2889_v42, %v1612_v18  ;;  %v1781_v39 = vadd.f32 %v3760_v36, %v1610_v25 }
 0x164   : > { %v2894_v19 = vpop.f32.mrf.mxu1  ;;  %v1617_v40 = vadd.f32 %v2870_v12, %v1446_v26  ;;  %v1611_v30 = vadd.f32 %v1582_v49, %v1440_v32  ;;  %v1785_v46 = vadd.f32 %v1766_v5, %v1614_v27  ;;  %v3761_v51 = vld [vmem:[#allocation13_spill] sm:$0xff] }
 0x165   : > { %v1598_v24 = vpop.f32.mrf.mxu0  ;;  %v1613_v34 = vadd.f32 %v2866_v45, %v1442_v23  ;;  %v1444_v28 = vadd.f32 %v3759_v37, %v1162_v20 }
 0x166   : > { %v1769_v35 = vpop.f32.mrf.mxu1  ;;  %v1788_v53 = vadd.f32 %v2894_v19, %v1617_v40  ;;  %v3762_v49 = vld [vmem:[#allocation14_spill] sm:$0xff] }
 0x167   : > { %v1615_v38 = vadd.f32 %v1598_v24, %v1444_v28  ;;  %v1784_v42 = vadd.f32 %v3761_v51, %v1613_v34  ;;  %v1782_v56 = vadd.f32 %v3762_v49, %v1611_v30 }
 0x169   : > { %v1786_v2 = vadd.f32 %v1769_v35, %v1615_v38 }
 0x177   : > { %v2913_v41 = vpop.f32.mrf.mxu0 }
 0x178   : > { %v2065_v44 = vadd.f32 %v2913_v41, %v1783_v33  ;;  %v2917_v43 = vpop.f32.mrf.mxu1 }
 0x179   : > { %v3656_v48 = vadd.f32 %v2917_v43, %v1787_v31  ;;  %v2032_v50 = vpop.f32.mrf.mxu0 }
 0x17a   : > { %2073 = vst [vmem:[%s196_s30 + $0x10] sm:$0xff] %v2065_v44  ;;  %v2063_v45 = vadd.f32 %v2032_v50, %v1781_v39  ;;  %v2048_v52 = vpop.f32.mrf.mxu1  ;;  %v2094_v63 = vmul.f32 %v2065_v44, %v2065_v44 }
 0x17b   : > { %2077 = vst [vmem:[%s196_s30 + $0x30] sm:$0xff] %v3656_v48  ;;  %v2067_v54 = vadd.f32 %v2048_v52, %v1785_v46  ;;  %v2914_v55 = vpop.f32.mrf.mxu0 }
 0x17c   : > { %2071 = vst [vmem:[%s196_s30] sm:$0xff] %v2063_v45  ;;  %v2066_v57 = vadd.f32 %v2914_v55, %v1784_v42  ;;  %v2918_v58 = vpop.f32.mrf.mxu1  ;;  %v2092_v4 = vmul.f32 %v2063_v45, %v2063_v45 }
 0x17d   : > { %2075 = vst [vmem:[%s196_s30 + $0x20] sm:$0xff] %v2067_v54  ;;  %v2070_v3 = vadd.f32 %v2918_v58, %v1788_v53  ;;  %v2035_v59 = vpop.f32.mrf.mxu0 }
 0x17e   : > { %2074 = vst [vmem:[%s196_s30 + $0x18] sm:$0xff] %v2066_v57  ;;  %v2064_v60 = vadd.f32 %v2035_v59, %v1782_v56  ;;  %v2051_v9 = vpop.f32.mrf.mxu1 }
 0x17f   : > { %2078 = vst [vmem:[%s196_s30 + $0x38] sm:$0xff] %v2070_v3  ;;  %v2068_v47 = vadd.f32 %v2051_v9, %v1786_v2 }
 0x180   : > { %2072 = vst [vmem:[%s196_s30 + $0x8] sm:$0xff] %v2064_v60  ;;  %v2079_v61 = vadd.f32 %v2064_v60, %v2063_v45  ;;  %v2093_v62 = vmul.f32 %v2064_v60, %v2064_v60 }
 0x181   : > { %2076 = vst [vmem:[%s196_s30 + $0x28] sm:$0xff] %v2068_v47 }
 0x182   : > { %v2080_v5 = vadd.f32 %v2079_v61, %v2065_v44  ;;  %v2100_v6 = vadd.f32 %v2093_v62, %v2092_v4 }
 0x183   : > { %3107 = shalt.err (!%p3104_p5)
}
 0x184   : > { %s3108_s23 = scalar_lea.hbm %s3665_s9, 1024  ;;  %s3112_s27 = scalar_lea.hbm %s3743_s2, 2048 }
 0x185   : > { %p3109_p6 = scmp.ne.s32.totalorder %s3665_s9, %s3108_s23  ;;  %p3113_p10 = scmp.lt.s32.totalorder %s3665_s9, %s3743_s2 }
 0x186   : > { %p3114_p11 = scmp.lt.s32.totalorder %s3112_s27, %s3108_s23 }
 0x187   : > { %p3110_p7 = pnand %p3109_p6, %p3266_p4 }
 0x188   : > { %p3115_p12 = por %p3114_p11, %p3113_p10 }
 0x189   : > { %p3111_p9 = pneg %p3110_p7 }
 0x18b   : > { %p3116_p13 = pnand %p3115_p12, %p3111_p9 }
 0x18d   : > { %3119 = shalt.err (!%p3116_p13)
}
 0x18e   : > { %s3203_s4 = smov 128   ;;  %s3204_s7 = smov 8   ;;  %v2095_v11 = vmul.f32 %v2066_v57, %v2066_v57  ;;  %v2101_v0 = vadd.f32 %v2100_v6, %v2094_v63  ;;  %v2081_v1 = vadd.f32 %v2080_v5, %v2066_v57  ;;  %v2096_v10 = vmul.f32 %v2067_v54, %v2067_v54 }
 0x18f   : > { %2936 = dma.vmem_to_hbm [thread:$0]  (%p3266_p4), %s3667_s5, 1024, %s3665_s9, %s2117_s10, %s3203_s4, %s3203_s4, %s3204_s7   ;;  %v2097_v17 = vmul.f32 %v2068_v47, %v2068_v47  ;;  %v2098_v15 = vmul.f32 %v3656_v48, %v3656_v48  ;;  %v2099_v19 = vmul.f32 %v2070_v3, %v2070_v3  ;;  %vm2113_vm3 = vcmask 1040384  }
 0x190   : > { %v2082_v13 = vadd.f32 %v2081_v1, %v2067_v54  ;;  %v2102_v7 = vadd.f32 %v2101_v0, %v2095_v11  ;;  %s2277_s5 = sshll.u32 %s3649_s28, 1  ;;  %s2591_s8 = sshll.u32 %s3192_s15, 5 }
 0x191   : > { %s203_s9 = scalar_lea.vmem [#allocation4], %s2277_s5  ;;  %s3700_s19 = scalar_lea.hbm %s3744_s3, %s2591_s8 }
 0x192   : > { %v2083_v8 = vadd.f32 %v2082_v13, %v2068_v47  ;;  %v2103_v12 = vadd.f32 %v2102_v7, %v2096_v10  ;;  %s2153_s10 = sshll.u32 %s203_s9, 4  ;;  %s2122_s21 = scalar_lea.sflag [#allocation5], %s3649_s28  ;;  %s2154_s10 = int_to_ptr.vmem [resolvable:$true] %s2153_s10 }
 0x193   : > { %s3120_s23 = scalar_lea.vmem %s2154_s10, 32  ;;  %s3205_s15 = smov [#allocation4]  }
 0x194   : > { %v2084_v16 = vadd.f32 %v2083_v8, %v3656_v48  ;;  %v2104_v18 = vadd.f32 %v2103_v12, %v2097_v17  ;;  %p3121_p0 = scmp.ne.s32.totalorder %s2154_s10, %s3120_s23  ;;  %s3124_s26 = sshll.u32 %s3205_s15, 4  ;;  %s3125_s26 = int_to_ptr.vmem [resolvable:$false] %s3124_s26 }
 0x195   : > { %s3126_s6 = scalar_lea.vmem %s3125_s26, 64  ;;  %p3127_p3 = scmp.lt.s32.totalorder %s2154_s10, %s3125_s26 }
 0x196   : > { %v2085_v14 = vadd.f32 %v2084_v16, %v2070_v3  ;;  %v2105_v20 = vadd.f32 %v2104_v18, %v2098_v15  ;;  %p3122_p1 = pnand %p3121_p0, %p3266_p4  ;;  %p3128_p5 = scmp.lt.s32.totalorder %s3126_s6, %s3120_s23 }
 0x198   : > { %v2086_v21 = vrot.slane %v2085_v14, 4  ;;  %v2106_v22 = vadd.f32 %v2105_v20, %v2099_v19  ;;  %p3123_p2 = pneg %p3122_p1  ;;  %p3129_p6 = por %p3128_p5, %p3127_p3 }
 0x19a   : > { %v2087_v23 = vadd.f32 %v2086_v21, %v2085_v14  ;;  %v2107_v25 = vrot.slane %v2106_v22, 4  ;;  %p3130_p7 = pnand %p3129_p6, %p3123_p2 }
 0x19c   : > { %v2088_v26 = vrot.slane %v2087_v23, 2  ;;  %v2108_v27 = vadd.f32 %v2107_v25, %v2106_v22 }
 0x19e   : > { %v2089_v24 = vadd.f32 %v2088_v26, %v2087_v23  ;;  %v2109_v29 = vrot.slane %v2108_v27, 2 }
 0x1a0   : > { %v2090_v32 = vrot.slane %v2089_v24, 1  ;;  %v2110_v33 = vadd.f32 %v2109_v29, %v2108_v27 }
 0x1a2   : > { %v2111_v34 = vrot.slane %v2110_v33, 1  ;;  %v2091_v35 = vadd.f32 %v2090_v32, %v2089_v24 }
 0x1a4   : > { %v2112_v37 = vadd.f32 %v2111_v34, %v2110_v33 }
 0x1a6   : > { %v2114_v28 = vsel %vm2113_vm3, %v2091_v35, %v2112_v37 }
 0x1a7   : > { %2115 = vst [vmem:[%s203_s9] sm:$0x3] %v2114_v28 }
 0x1a8   : > { %3133 = shalt.err (!%p3130_p7)
}
 0x1a9   : > { %s3134_s27 = scalar_lea.hbm %s3700_s19, 32  ;;  %s3138_s30 = scalar_lea.hbm %s3744_s3, 64 }
 0x1aa   : > { %p3135_p9 = scmp.ne.s32.totalorder %s3700_s19, %s3134_s27  ;;  %p3139_p12 = scmp.lt.s32.totalorder %s3700_s19, %s3744_s3 }
 0x1ab   : > { %p3140_p13 = scmp.lt.s32.totalorder %s3138_s30, %s3134_s27 }
 0x1ac   : > { %p3136_p10 = pnand %p3135_p9, %p3266_p4 }
 0x1ad   : > { %p3141_p0 = por %p3140_p13, %p3139_p12 }
 0x1ae   : > { %p3137_p11 = pneg %p3136_p10 }
 0x1b0   : > { %p3142_p1 = pnand %p3141_p0, %p3137_p11 }
 0x1b2   : > { %3145 = shalt.err (!%p3142_p1)
}
 0x1b3   : > { %2937 = dma.vmem_to_hbm [thread:$0]  (%p3266_p4), %s2154_s10, 32, %s3700_s19, %s2122_s21  }
 0x1b4 PF: > { %p2947_p2 = scmp.ge.s32.totalorder %s3200_s17, 2  ;;  %s2165_s5 = sand.u32 1, %s3180_s12  }
 0x1b5   : > { %s2166_s8 = scalar_lea.sflag [#allocation3], %s2165_s5 }
 0x1b6   : > { %p2941_p3 = pnand %p2947_p2, %p3273_p8 }
 0x1b8   : > { %p2942_p5 = pneg %p2941_p3 }
 0x1ba   : > { %3171 = dma.done.wait (%p2942_p5), %s2166_s8, 1024  }
 0x1bb   : > { %3173 = vsyncadd (%p2942_p5), %s2166_s8, 4294966272  ;;  %s2175_s9 = scalar_lea.sflag [#allocation5], %s2165_s5 }
 0x1bc   : > { %3175 = dma.done.wait (%p2942_p5), %s2175_s9, 32  }
 0x1bd   : > { %3177 = vsyncadd (%p2942_p5), %s2175_s9, 4294967264  ;;  %s20_s17 = sadd.s32 1, %s3200_s17   ;;  %s3763_s12 = smov %s3184_s13 }
 0x1be   : > { %p17_p6 = scmp.ge.s32.totalorder %s20_s17, 4   ;;  %s3764_s13 = smov %s3188_s14 }
 0x1bf   : > { %s3765_s14 = smov %s3279_s25  ;;  %s3766_s15 = smov %s3196_s16 }
 0x1c0   : > { %s3767_s16 = smov %s3769_s20  ;;  %19 = sbr.rel (!%p17_p6) target bundleno = 6 (0x6), region = 96 }
 0x1c5   :  { %2180 = vsyncpa [#allocation3], 1 }
 0x1c6   :  { %2182 = vsyncpa [#allocation3 + $0x1], 1 }
 0x1c7   :  { %2183 = vsyncpa [#allocation5], 1 }
 0x1c8   :  { %2185 = vsyncpa [#allocation5 + $0x1], 1 }

</bundles_post_ra>
